<compile_context>
chip_gen: v7x
topology: tpu7x:2x2x1
jax: 0.10.0
libtpu: 0.0.40
codegen_flags: <defaults>
</compile_context>

<pallas_src>
import functools

import jax
import jax.numpy as jnp
import numpy as np
from jax.experimental import pallas as pl
from jax.experimental.pallas import tpu as pltpu

_NEG_BIG = -1e30  # finite stand-in for -inf that is safe under exp()


def _semicon_kernel(q_ref, k_ref, mask_ref, a_out_ref, lse_out_ref,
                    m_scr, l_scr, a_scr,
                    *, tile, period_blocks, valid_per_period, has_pad):
    """One (row-tile, col-tile) step of the fused loss.

    q is pre-scaled by 1/temperature, so raw_ij = <f_i, f_j>/T already.  The
    diagonal / padded-column masking is gated to the few tiles that need it.
    """
    qi = pl.program_id(0)
    ki = pl.program_id(1)

    @pl.when(ki == 0)
    def _init():
        m_scr[...] = jnp.full_like(m_scr, _NEG_BIG)
        l_scr[...] = jnp.zeros_like(l_scr)
        a_scr[...] = jnp.zeros_like(a_scr)

    # raw = q . k^T ; contract dim 1 of both operands directly (no k.T copy),
    # bf16 MXU inputs with f32 accumulation.  1/temperature already folded into q.
    raw = jax.lax.dot_general(
        q_ref[...], k_ref[...], (((1,), (1,)), ((), ())),
        preferred_element_type=jnp.float32)                        # [T, T] f32
    sm_tile = mask_ref[...].astype(jnp.float32)                    # [T, T] soft mask

    m_prev = m_scr[...]                                            # [T, 1]
    l_prev = l_scr[...]
    a_prev = a_scr[...]

    def _accumulate(raw_lse, sm):
        # Online log-sum-exp over the (possibly masked) logits + linear accumulators.
        m_new = jnp.maximum(m_prev, jnp.max(raw_lse, axis=1, keepdims=True))
        alpha = jnp.exp(m_prev - m_new)
        l_scr[...] = alpha * l_prev + jnp.sum(jnp.exp(raw_lse - m_new),
                                              axis=1, keepdims=True)
        m_scr[...] = m_new
        # `raw` (not raw_lse): invalid entries are already zeroed in sm.
        a_scr[...] = a_prev + jnp.sum(sm * raw, axis=1, keepdims=True)

    is_diag = qi == ki
    if has_pad:  # static: only emitted when a mask period actually carries padding
        is_pad_tile = (ki % period_blocks) == (period_blocks - 1)
        needs_mask = jnp.logical_or(is_diag, is_pad_tile)
    else:
        needs_mask = is_diag

    @pl.when(jnp.logical_not(needs_mask))
    def _fast_path():
        # Hot path: no iota / compare / select at all.
        _accumulate(raw, sm_tile)

    @pl.when(needs_mask)
    def _masked_path():
        # Diagonal tile (self-contrast) and/or last tile of a mask period (padding).
        rows = qi * tile + jax.lax.broadcasted_iota(jnp.int32, (tile, 1), 0)
        cols = ki * tile + jax.lax.broadcasted_iota(jnp.int32, (1, tile), 1)
        invalid = rows == cols
        if has_pad:
            col_in_period = ((ki % period_blocks) * tile
                             + jax.lax.broadcasted_iota(jnp.int32, (1, tile), 1))
            invalid = jnp.logical_or(invalid, col_in_period >= valid_per_period)
        _accumulate(jnp.where(invalid, _NEG_BIG, raw),
                    jnp.where(invalid, 0.0, sm_tile))

    @pl.when(ki == pl.num_programs(1) - 1)
    def _finalize():
        a_out_ref[...] = a_scr[...]
        lse_out_ref[...] = m_scr[...] + jnp.log(l_scr[...])


def _round_up(x, m):
    return (x + m - 1) // m * m


def _vmem_cap_bytes():
    """Generation-aware ceiling for the scoped-VMEM request."""
    try:
        kind = jax.devices()[0].device_kind.lower()
    except Exception:
        kind = ""
    if "v5" in kind or "v6" in kind:
        return 96 << 20        # 128 MiB physical per TensorCore
    return 40 << 20            # conservative for v7x (64 MiB / TC) and unknown chips


def semicon_loss(features, soft_mask, *, temperature=0.07, contrast_mode="all",
                 base_temperature=0.07, ambiguous_mask=None):
    """Pallas TPU implementation of SemiConLoss.forward (contrast_mode='all').

    features : [B, V, ...] (trailing dims flattened to D)
    soft_mask: [B, B] (implicitly repeated to [N, N], N = V*B) or already [N, N]
    Returns a scalar float32 loss.
    """
    del ambiguous_mask  # TODO(synk): accepted by the torch forward but never used there.
    if features.ndim < 3:
        raise ValueError("`features` needs to be [bsz, n_views, ...]")
    if contrast_mode != "all":
        # TODO(synk): contrast_mode='one' (single-anchor) is not implemented.
        raise ValueError("only contrast_mode='all' is implemented")
    if soft_mask is None:
        raise ValueError("soft_mask is required")

    B, V = features.shape[0], features.shape[1]
    feat = features.reshape(B, V, -1).astype(jnp.float32)
    D = feat.shape[-1]
    N = V * B
    inv_temp = float(1.0 / temperature)
    loss_scale = float(-(temperature / base_temperature))

    # torch.cat(torch.unbind(features, dim=1), dim=0) -> view-major layout.
    per_view = jnp.transpose(feat, (1, 0, 2))                     # [V, B, D]

    if soft_mask.shape[0] == B:
        # ---- periodic-mask path: global mask[i, j] == soft_mask[i % B, j % B]. ----
        # Pad each view's B rows up to a 128-multiple so tiles stay MXU-aligned and
        # the small mask is streamed directly via a modulo index_map (the [N, N]
        # mask is never materialized).
        tile = 256 if _round_up(B, 256) == _round_up(B, 128) else 128
        period = _round_up(B, tile)
        valid_per_period = B
        if period != B:
            per_view = jnp.pad(per_view, ((0, 0), (0, period - B), (0, 0)))
            mask_arr = jnp.pad(soft_mask.astype(jnp.float32),
                               ((0, period - B), (0, period - B))).astype(jnp.bfloat16)
        else:
            mask_arr = soft_mask.astype(jnp.bfloat16)   # bf16 halves mask HBM traffic
        n_pad = V * period
        contrast = per_view.reshape(n_pad, D)
        sm_seen = mask_arr.astype(jnp.float32)[:B, :B]  # exactly what the kernel sees
        # S_i over the full [N, N] mask, minus the single global-diagonal entry.
        s_row = V * jnp.sum(sm_seen, axis=1) - jnp.diagonal(sm_seen)      # [B]
    elif soft_mask.shape[0] == N:
        # ---- general fallback: mask already given as [N, N]. ----
        tile = 256 if (_round_up(N, 256) == _round_up(N, 128)
                       and _round_up(N, 256) >= 512) else 128
        period = n_pad = _round_up(N, tile)
        valid_per_period = N
        contrast = per_view.reshape(N, D)
        sm_full = soft_mask.astype(jnp.float32)
        if n_pad != N:
            contrast = jnp.pad(contrast, ((0, n_pad - N), (0, 0)))
            mask_arr = jnp.pad(sm_full, ((0, n_pad - N), (0, n_pad - N))).astype(jnp.bfloat16)
        else:
            mask_arr = sm_full   # no pad needed; re-casting would only add HBM traffic
        sm_seen = mask_arr.astype(jnp.float32)[:N, :N]
        s_row = jnp.sum(sm_seen, axis=1) - jnp.diagonal(sm_seen)          # [N]
    else:
        raise ValueError("soft_mask must be [bsz, bsz] or [n_views*bsz, n_views*bsz]")

    # Fold 1/temperature into the anchor operand (one O(N*D) multiply instead of a
    # [T, T] multiply per grid step); feed both MXU operands as bf16, accumulate f32.
    q = (contrast * inv_temp).astype(jnp.bfloat16)
    k = contrast.astype(jnp.bfloat16)

    pb = period // tile                     # mask-tiling period, in blocks
    nq = n_pad // tile
    has_pad = (valid_per_period % tile) != 0

    kernel = functools.partial(
        _semicon_kernel, tile=tile, period_blocks=pb,
        valid_per_period=valid_per_period, has_pad=has_pad)

    # Per-step VMEM budget: double-buffered q/k/mask tiles + f32 tile temporaries.
    # TODO(synk): for very large D (input double-buffers ~4*tile*D*2 B), chunk D with
    # a third grid axis instead of raising the limit further.
    est = (4 * tile * D * 2                                   # q + k, double-buffered bf16
           + 2 * tile * tile * mask_arr.dtype.itemsize        # mask, double-buffered
           + 8 * tile * tile * 4                              # f32 tile temporaries
           + 12 * tile * 128 * 4                              # (T,1) stats/outs, lane-padded
           + (2 << 20))                                       # headroom
    vmem_limit = int(min(max(est, 16 << 20), _vmem_cap_bytes()))

    grid_spec = pltpu.PrefetchScalarGridSpec(
        num_scalar_prefetch=0,
        grid=(nq, nq),
        in_specs=[
            pl.BlockSpec((tile, D), lambda qi, ki: (qi, 0)),                 # anchor rows
            pl.BlockSpec((tile, D), lambda qi, ki: (ki, 0)),                 # contrast cols
            pl.BlockSpec((tile, tile), lambda qi, ki: (qi % pb, ki % pb)),   # soft-mask tile
        ],
        out_specs=(pl.BlockSpec((tile, 1), lambda qi, ki: (qi, 0)),          # A_i
                   pl.BlockSpec((tile, 1), lambda qi, ki: (qi, 0))),         # LSE_i
        scratch_shapes=[
            pltpu.VMEM((tile, 1), jnp.float32),   # running max m
            pltpu.VMEM((tile, 1), jnp.float32),   # rescaled exp-sum l
            pltpu.VMEM((tile, 1), jnp.float32),   # A = sum sm*raw
        ],
    )

    a_sum, lse = pl.pallas_call(
        kernel,
        out_shape=(jax.ShapeDtypeStruct((n_pad, 1), jnp.float32),
                   jax.ShapeDtypeStruct((n_pad, 1), jnp.float32)),
        grid_spec=grid_spec,
        compiler_params=pltpu.CompilerParams(
            dimension_semantics=("parallel", "arbitrary"),
            vmem_limit_bytes=vmem_limit),
    )(q, k, mask_arr)

    # Finalize on tiny per-row vectors.  Padded rows are sliced away BEFORE the
    # divide, so padding can never produce 0/0 NaN.  Rows whose real soft-mask row
    # is all-zero still divide by zero, exactly like the PyTorch reference.
    a_valid = a_sum.reshape(-1, period)[:, :valid_per_period]
    lse_valid = lse.reshape(-1, period)[:, :valid_per_period]
    mean_log_prob_pos = (a_valid - lse_valid * s_row) / s_row
    # loss.view(anchor_count, batch_size).mean() == mean over the N real rows.
    return jnp.mean(loss_scale * mean_log_prob_pos)


def _reference_loss(features, soft_mask, temperature=0.07, base_temperature=0.07,
                    mimic_kernel=False):
    """Pure-JAX reference mirroring the PyTorch forward.

    mimic_kernel=True reproduces the kernel's quantization exactly (bf16 pre-scaled
    q, bf16 k, bf16 soft mask) so the fused/tiled math can be checked tightly.
    """
    B, V = features.shape[0], features.shape[1]
    feat = features.reshape(B, V, -1).astype(jnp.float32)
    N = V * B
    contrast = jnp.transpose(feat, (1, 0, 2)).reshape(N, -1)
    inv_t = 1.0 / temperature
    if mimic_kernel:
        qm = (contrast * inv_t).astype(jnp.bfloat16).astype(jnp.float32)
        km = contrast.astype(jnp.bfloat16).astype(jnp.float32)
        adc = jnp.matmul(qm, km.T, precision=jax.lax.Precision.HIGHEST)
        sm_small = soft_mask.astype(jnp.bfloat16).astype(jnp.float32)
    else:
        adc = jnp.matmul(contrast, contrast.T,
                         precision=jax.lax.Precision.HIGHEST) * inv_t
        sm_small = soft_mask.astype(jnp.float32)
    sm = jnp.tile(sm_small, (V, V)) if sm_small.shape[0] != N else sm_small
    logits = adc - jnp.max(adc, axis=1, keepdims=True)
    lm = 1.0 - jnp.eye(N, dtype=jnp.float32)
    sm = sm * lm
    exp_logits = jnp.exp(logits) * lm
    log_prob = logits - jnp.log(jnp.sum(exp_logits, axis=1, keepdims=True))
    mlpp = jnp.sum(sm * log_prob, axis=1) / jnp.sum(sm, axis=1)
    loss = -(temperature / base_temperature) * mlpp
    return jnp.mean(loss)


if __name__ == "__main__":
    key = jax.random.PRNGKey(0)
    k1, k2 = jax.random.split(key)

    B, V, D = 16, 2, 32
    features = jax.random.normal(k1, (B, V, D), dtype=jnp.float32)
    # L2-normalize feature vectors (typical contrastive-loss input).
    features = features / jnp.linalg.norm(features, axis=-1, keepdims=True)
    # Soft positive mask in [0, 1], shape [B, B].
    soft_mask = jax.random.uniform(k2, (B, B), dtype=jnp.float32)

    # Path 1: [B, B] soft mask streamed periodically (never materialized as [N, N]).
    loss = jax.block_until_ready(semicon_loss(features, soft_mask))
    # Path 2: mask already supplied as [N, N] (general fallback path).
    loss_full = jax.block_until_ready(
        semicon_loss(features, jnp.tile(soft_mask, (V, V))))

    # Tight check vs. a reference seeing the same bf16-rounded q/k/mask (validates the
    # fused/tiled kernel math), plus a looser check vs. the full-f32 reference.
    ref_tight = jax.block_until_ready(
        _reference_loss(features, soft_mask, mimic_kernel=True))
    ref_f32 = jax.block_until_ready(_reference_loss(features, soft_mask))

    assert np.isfinite(np.asarray(loss)), loss
    assert np.allclose(np.asarray(loss), np.asarray(ref_tight),
                       rtol=2e-3, atol=2e-3), (loss, ref_tight)
    assert np.allclose(np.asarray(loss_full), np.asarray(ref_tight),
                       rtol=2e-3, atol=2e-3), (loss_full, ref_tight)
    assert np.allclose(np.asarray(loss), np.asarray(ref_f32),
                       rtol=5e-2, atol=5e-2), (loss, ref_f32)

    print("KERNEL_OK")
</pallas_src>

<mosaic_0001>
module attributes {stable_mosaic.version = 11 : i64} {
  func.func @_semicon_kernel(%arg0: i32, %arg1: i32, %arg2: memref<128x32xbf16, #tpu.memory_space<vmem>>, %arg3: memref<128x32xbf16, #tpu.memory_space<vmem>>, %arg4: memref<128x128xbf16, #tpu.memory_space<vmem>>, %arg5: memref<128x1xf32, #tpu.memory_space<vmem>>, %arg6: memref<128x1xf32, #tpu.memory_space<vmem>>, %arg7: memref<128x1xf32, #tpu.memory_space<vmem>>, %arg8: memref<128x1xf32, #tpu.memory_space<vmem>>, %arg9: memref<128x1xf32, #tpu.memory_space<vmem>>) attributes {dimension_semantics = [#tpu.dimension_semantics<parallel>, #tpu.dimension_semantics<arbitrary>], iteration_bounds = array<i64: 2, 2>, scalar_prefetch = 0 : i64, scratch_operands = 3 : i64, tpu.core_type = #tpu.core_type<tc>, window_params = [{transform_indices = @transform_0, window_bounds = array<i64: 128, 32>}, {transform_indices = @transform_1, window_bounds = array<i64: 128, 32>}, {transform_indices = @transform_2, window_bounds = array<i64: 128, 128>}, {transform_indices = @transform_3, window_bounds = array<i64: 128, 1>}, {transform_indices = @transform_4, window_bounds = array<i64: 128, 1>}]} {
    %c0_i32 = arith.constant 0 : i32
    %0 = arith.cmpi eq, %arg1, %c0_i32 : i32
    %1 = arith.extui %0 : i1 to i32
    %c0_i32_0 = arith.constant 0 : i32
    %2 = arith.cmpi ne, %1, %c0_i32_0 : i32
    scf.if %2 {
      %cst_22 = arith.constant -1.000000e+30 : f32
      %32 = vector.broadcast %cst_22 : f32 to vector<128x1xf32>
      %c0_23 = arith.constant 0 : index
      %c0_24 = arith.constant 0 : index
      %33 = vector.load %arg7[%c0_23, %c0_24] : memref<128x1xf32, #tpu.memory_space<vmem>>, vector<128x1xf32>
      tpu.vector_store %arg7[%c0_23, %c0_24], %32 {strides = array<i32>} : memref<128x1xf32, #tpu.memory_space<vmem>>, vector<128x1xf32>,
      %cst_25 = arith.constant 0.000000e+00 : f32
      %34 = vector.broadcast %cst_25 : f32 to vector<128x1xf32>
      %c0_26 = arith.constant 0 : index
      %c0_27 = arith.constant 0 : index
      %35 = vector.load %arg8[%c0_26, %c0_27] : memref<128x1xf32, #tpu.memory_space<vmem>>, vector<128x1xf32>
      tpu.vector_store %arg8[%c0_26, %c0_27], %34 {strides = array<i32>} : memref<128x1xf32, #tpu.memory_space<vmem>>, vector<128x1xf32>,
      %cst_28 = arith.constant 0.000000e+00 : f32
      %36 = vector.broadcast %cst_28 : f32 to vector<128x1xf32>
      %c0_29 = arith.constant 0 : index
      %c0_30 = arith.constant 0 : index
      %37 = vector.load %arg9[%c0_29, %c0_30] : memref<128x1xf32, #tpu.memory_space<vmem>>, vector<128x1xf32>
      tpu.vector_store %arg9[%c0_29, %c0_30], %36 {strides = array<i32>} : memref<128x1xf32, #tpu.memory_space<vmem>>, vector<128x1xf32>,
    } else {
    }
    %c0 = arith.constant 0 : index
    %c0_1 = arith.constant 0 : index
    %3 = vector.load %arg2[%c0, %c0_1] : memref<128x32xbf16, #tpu.memory_space<vmem>>, vector<128x32xbf16>
    %c0_2 = arith.constant 0 : index
    %c0_3 = arith.constant 0 : index
    %4 = vector.load %arg3[%c0_2, %c0_3] : memref<128x32xbf16, #tpu.memory_space<vmem>>, vector<128x32xbf16>
    %cst = arith.constant dense<0.000000e+00> : vector<128x128xf32>
    %5 = tpu.matmul %3, %4, %cst {dimension_numbers = #tpu.dot_dimension_numbers<[1], [1], [0], [0], [0, 0, 1, 0], [], []>} : vector<128x32xbf16>, vector<128x32xbf16>, vector<128x128xf32> -> vector<128x128xf32>
    %c0_4 = arith.constant 0 : index
    %c0_5 = arith.constant 0 : index
    %6 = vector.load %arg4[%c0_4, %c0_5] : memref<128x128xbf16, #tpu.memory_space<vmem>>, vector<128x128xbf16>
    %7 = arith.extf %6 : vector<128x128xbf16> to vector<128x128xf32>
    %c0_6 = arith.constant 0 : index
    %c0_7 = arith.constant 0 : index
    %8 = vector.load %arg7[%c0_6, %c0_7] : memref<128x1xf32, #tpu.memory_space<vmem>>, vector<128x1xf32>
    %c0_8 = arith.constant 0 : index
    %c0_9 = arith.constant 0 : index
    %9 = vector.load %arg8[%c0_8, %c0_9] : memref<128x1xf32, #tpu.memory_space<vmem>>, vector<128x1xf32>
    %c0_10 = arith.constant 0 : index
    %c0_11 = arith.constant 0 : index
    %10 = vector.load %arg9[%c0_10, %c0_11] : memref<128x1xf32, #tpu.memory_space<vmem>>, vector<128x1xf32>
    %11 = arith.cmpi eq, %arg0, %arg1 : i32
    %c1_i32 = arith.constant 1 : i32
    %c0_i32_12 = arith.constant 0 : i32
    %12 = arith.cmpi eq, %c1_i32, %c0_i32_12 : i32
    %c1_i32_13 = arith.constant 1 : i32
    %13 = arith.select %12, %c1_i32_13, %c1_i32 : i32
    %14 = arith.remsi %arg1, %13 : i32
    %c0_i32_14 = arith.constant 0 : i32
    %15 = arith.cmpi ne, %14, %c0_i32_14 : i32
    %c0_i32_15 = arith.constant 0 : i32
    %16 = arith.cmpi slt, %14, %c0_i32_15 : i32
    %c0_i32_16 = arith.constant 0 : i32
    %17 = arith.cmpi slt, %13, %c0_i32_16 : i32
    %18 = arith.xori %16, %17 : i1
    %19 = arith.andi %18, %15 : i1
    %20 = arith.addi %14, %13 : i32
    %21 = arith.select %19, %20, %14 : i32
    %c0_i32_17 = arith.constant 0 : i32
    %22 = arith.cmpi eq, %21, %c0_i32_17 : i32
    %23 = arith.ori %11, %22 : i1
    %true = arith.constant true
    %24 = arith.xori %23, %true : i1
    %25 = arith.extui %24 : i1 to i32
    %c0_i32_18 = arith.constant 0 : i32
    %26 = arith.cmpi ne, %25, %c0_i32_18 : i32
    scf.if %26 {
      %cst_22 = arith.constant dense<0xFF800000> : vector<128xf32>
      %32 = vector.multi_reduction <maximumf>, %5, %cst_22 [1] : vector<128x128xf32> to vector<128xf32>
      %33 = vector.shape_cast %32 : vector<128xf32> to vector<128x1xf32>
      %34 = arith.maximumf %8, %33 : vector<128x1xf32>
      %35 = arith.subf %8, %34 : vector<128x1xf32>
      %36 = math.exp %35 : vector<128x1xf32>
      %37 = arith.mulf %36, %9 : vector<128x1xf32>
      %38 = vector.broadcast %34 : vector<128x1xf32> to vector<128x128xf32>
      %39 = arith.subf %5, %38 : vector<128x128xf32>
      %40 = math.exp %39 : vector<128x128xf32>
      %cst_23 = arith.constant dense<0.000000e+00> : vector<128xf32>
      %41 = vector.multi_reduction <add>, %40, %cst_23 [1] : vector<128x128xf32> to vector<128xf32>
      %42 = vector.shape_cast %41 : vector<128xf32> to vector<128x1xf32>
      %43 = arith.addf %37, %42 : vector<128x1xf32>
      %c0_24 = arith.constant 0 : index
      %c0_25 = arith.constant 0 : index
      %44 = vector.load %arg8[%c0_24, %c0_25] : memref<128x1xf32, #tpu.memory_space<vmem>>, vector<128x1xf32>
      tpu.vector_store %arg8[%c0_24, %c0_25], %43 {strides = array<i32>} : memref<128x1xf32, #tpu.memory_space<vmem>>, vector<128x1xf32>,
      %c0_26 = arith.constant 0 : index
      %c0_27 = arith.constant 0 : index
      %45 = vector.load %arg7[%c0_26, %c0_27] : memref<128x1xf32, #tpu.memory_space<vmem>>, vector<128x1xf32>
      tpu.vector_store %arg7[%c0_26, %c0_27], %34 {strides = array<i32>} : memref<128x1xf32, #tpu.memory_space<vmem>>, vector<128x1xf32>,
      %46 = arith.mulf %7, %5 : vector<128x128xf32>
      %cst_28 = arith.constant dense<0.000000e+00> : vector<128xf32>
      %47 = vector.multi_reduction <add>, %46, %cst_28 [1] : vector<128x128xf32> to vector<128xf32>
      %48 = vector.shape_cast %47 : vector<128xf32> to vector<128x1xf32>
      %49 = arith.addf %10, %48 : vector<128x1xf32>
      %c0_29 = arith.constant 0 : index
      %c0_30 = arith.constant 0 : index
      %50 = vector.load %arg9[%c0_29, %c0_30] : memref<128x1xf32, #tpu.memory_space<vmem>>, vector<128x1xf32>
      tpu.vector_store %arg9[%c0_29, %c0_30], %49 {strides = array<i32>} : memref<128x1xf32, #tpu.memory_space<vmem>>, vector<128x1xf32>,
    } else {
    }
    %27 = arith.extui %23 : i1 to i32
    %c0_i32_19 = arith.constant 0 : i32
    %28 = arith.cmpi ne, %27, %c0_i32_19 : i32
    scf.if %28 {
      %c128_i32 = arith.constant 128 : i32
      %32 = arith.muli %arg0, %c128_i32 : i32
      %33 = tpu.iota {dimensions = array<i32: 0>} : vector<128x1xi32>
      %34 = vector.broadcast %32 : i32 to vector<128x1xi32>
      %35 = arith.addi %34, %33 : vector<128x1xi32>
      %c128_i32_22 = arith.constant 128 : i32
      %36 = arith.muli %arg1, %c128_i32_22 : i32
      %37 = tpu.iota {dimensions = array<i32: 1>} : vector<1x128xi32>
      %38 = vector.broadcast %36 : i32 to vector<1x128xi32>
      %39 = arith.addi %38, %37 : vector<1x128xi32>
      %40 = vector.broadcast %35 : vector<128x1xi32> to vector<128x128xi32>
      %41 = vector.broadcast %39 : vector<1x128xi32> to vector<128x128xi32>
      %42 = arith.cmpi eq, %40, %41 : vector<128x128xi32>
      %c1_i32_23 = arith.constant 1 : i32
      %c0_i32_24 = arith.constant 0 : i32
      %43 = arith.cmpi eq, %c1_i32_23, %c0_i32_24 : i32
      %c1_i32_25 = arith.constant 1 : i32
      %44 = arith.select %43, %c1_i32_25, %c1_i32_23 : i32
      %45 = arith.remsi %arg1, %44 : i32
      %c0_i32_26 = arith.constant 0 : i32
      %46 = arith.cmpi ne, %45, %c0_i32_26 : i32
      %c0_i32_27 = arith.constant 0 : i32
      %47 = arith.cmpi slt, %45, %c0_i32_27 : i32
      %c0_i32_28 = arith.constant 0 : i32
      %48 = arith.cmpi slt, %44, %c0_i32_28 : i32
      %49 = arith.xori %47, %48 : i1
      %50 = arith.andi %49, %46 : i1
      %51 = arith.addi %45, %44 : i32
      %52 = arith.select %50, %51, %45 : i32
      %c128_i32_29 = arith.constant 128 : i32
      %53 = arith.muli %52, %c128_i32_29 : i32
      %54 = tpu.iota {dimensions = array<i32: 1>} : vector<1x128xi32>
      %55 = vector.broadcast %53 : i32 to vector<1x128xi32>
      %56 = arith.addi %55, %54 : vector<1x128xi32>
      %c16_i32 = arith.constant 16 : i32
      %57 = vector.broadcast %c16_i32 : i32 to vector<1x128xi32>
      %58 = arith.cmpi sge, %56, %57 : vector<1x128xi32>
      %59 = vector.broadcast %58 : vector<1x128xi1> to vector<128x128xi1>
      %60 = arith.ori %42, %59 : vector<128x128xi1>
      %cst_30 = arith.constant -1.000000e+30 : f32
      %61 = vector.broadcast %cst_30 : f32 to vector<128x128xf32>
      %62 = arith.select %60, %61, %5 : vector<128x128xi1>, vector<128x128xf32>
      %cst_31 = arith.constant 0.000000e+00 : f32
      %63 = vector.broadcast %cst_31 : f32 to vector<128x128xf32>
      %64 = arith.select %60, %63, %7 : vector<128x128xi1>, vector<128x128xf32>
      %cst_32 = arith.constant dense<0xFF800000> : vector<128xf32>
      %65 = vector.multi_reduction <maximumf>, %62, %cst_32 [1] : vector<128x128xf32> to vector<128xf32>
      %66 = vector.shape_cast %65 : vector<128xf32> to vector<128x1xf32>
      %67 = arith.maximumf %8, %66 : vector<128x1xf32>
      %68 = arith.subf %8, %67 : vector<128x1xf32>
      %69 = math.exp %68 : vector<128x1xf32>
      %70 = arith.mulf %69, %9 : vector<128x1xf32>
      %71 = vector.broadcast %67 : vector<128x1xf32> to vector<128x128xf32>
      %72 = arith.subf %62, %71 : vector<128x128xf32>
      %73 = math.exp %72 : vector<128x128xf32>
      %cst_33 = arith.constant dense<0.000000e+00> : vector<128xf32>
      %74 = vector.multi_reduction <add>, %73, %cst_33 [1] : vector<128x128xf32> to vector<128xf32>
      %75 = vector.shape_cast %74 : vector<128xf32> to vector<128x1xf32>
      %76 = arith.addf %70, %75 : vector<128x1xf32>
      %c0_34 = arith.constant 0 : index
      %c0_35 = arith.constant 0 : index
      %77 = vector.load %arg8[%c0_34, %c0_35] : memref<128x1xf32, #tpu.memory_space<vmem>>, vector<128x1xf32>
      tpu.vector_store %arg8[%c0_34, %c0_35], %76 {strides = array<i32>} : memref<128x1xf32, #tpu.memory_space<vmem>>, vector<128x1xf32>,
      %c0_36 = arith.constant 0 : index
      %c0_37 = arith.constant 0 : index
      %78 = vector.load %arg7[%c0_36, %c0_37] : memref<128x1xf32, #tpu.memory_space<vmem>>, vector<128x1xf32>
      tpu.vector_store %arg7[%c0_36, %c0_37], %67 {strides = array<i32>} : memref<128x1xf32, #tpu.memory_space<vmem>>, vector<128x1xf32>,
      %79 = arith.mulf %64, %5 : vector<128x128xf32>
      %cst_38 = arith.constant dense<0.000000e+00> : vector<128xf32>
      %80 = vector.multi_reduction <add>, %79, %cst_38 [1] : vector<128x128xf32> to vector<128xf32>
      %81 = vector.shape_cast %80 : vector<128xf32> to vector<128x1xf32>
      %82 = arith.addf %10, %81 : vector<128x1xf32>
      %c0_39 = arith.constant 0 : index
      %c0_40 = arith.constant 0 : index
      %83 = vector.load %arg9[%c0_39, %c0_40] : memref<128x1xf32, #tpu.memory_space<vmem>>, vector<128x1xf32>
      tpu.vector_store %arg9[%c0_39, %c0_40], %82 {strides = array<i32>} : memref<128x1xf32, #tpu.memory_space<vmem>>, vector<128x1xf32>,
    } else {
    }
    %c1_i32_20 = arith.constant 1 : i32
    %29 = arith.cmpi eq, %arg1, %c1_i32_20 : i32
    %30 = arith.extui %29 : i1 to i32
    %c0_i32_21 = arith.constant 0 : i32
    %31 = arith.cmpi ne, %30, %c0_i32_21 : i32
    scf.if %31 {
      %c0_22 = arith.constant 0 : index
      %c0_23 = arith.constant 0 : index
      %32 = vector.load %arg9[%c0_22, %c0_23] : memref<128x1xf32, #tpu.memory_space<vmem>>, vector<128x1xf32>
      %c0_24 = arith.constant 0 : index
      %c0_25 = arith.constant 0 : index
      %33 = vector.load %arg5[%c0_24, %c0_25] : memref<128x1xf32, #tpu.memory_space<vmem>>, vector<128x1xf32>
      tpu.vector_store %arg5[%c0_24, %c0_25], %32 {strides = array<i32>} : memref<128x1xf32, #tpu.memory_space<vmem>>, vector<128x1xf32>,
      %c0_26 = arith.constant 0 : index
      %c0_27 = arith.constant 0 : index
      %34 = vector.load %arg7[%c0_26, %c0_27] : memref<128x1xf32, #tpu.memory_space<vmem>>, vector<128x1xf32>
      %c0_28 = arith.constant 0 : index
      %c0_29 = arith.constant 0 : index
      %35 = vector.load %arg8[%c0_28, %c0_29] : memref<128x1xf32, #tpu.memory_space<vmem>>, vector<128x1xf32>
      %36 = math.log %35 : vector<128x1xf32>
      %37 = arith.addf %34, %36 : vector<128x1xf32>
      %c0_30 = arith.constant 0 : index
      %c0_31 = arith.constant 0 : index
      %38 = vector.load %arg6[%c0_30, %c0_31] : memref<128x1xf32, #tpu.memory_space<vmem>>, vector<128x1xf32>
      tpu.vector_store %arg6[%c0_30, %c0_31], %37 {strides = array<i32>} : memref<128x1xf32, #tpu.memory_space<vmem>>, vector<128x1xf32>,
    } else {
    }
    return
  }
  func.func @transform_0(%arg0: i32, %arg1: i32) -> (i32, i32) {
    %c0_i32 = arith.constant 0 : i32
    %c0_i32_0 = arith.constant 0 : i32
    return %arg0, %c0_i32 : i32, i32
  }
  func.func @transform_1(%arg0: i32, %arg1: i32) -> (i32, i32) {
    %c0_i32 = arith.constant 0 : i32
    %c0_i32_0 = arith.constant 0 : i32
    return %arg1, %c0_i32 : i32, i32
  }
  func.func @transform_2(%arg0: i32, %arg1: i32) -> (i32, i32) {
    %c1_i32 = arith.constant 1 : i32
    %c0_i32 = arith.constant 0 : i32
    %0 = arith.cmpi eq, %c1_i32, %c0_i32 : i32
    %c1_i32_0 = arith.constant 1 : i32
    %1 = arith.select %0, %c1_i32_0, %c1_i32 : i32
    %2 = arith.remsi %arg0, %1 : i32
    %c0_i32_1 = arith.constant 0 : i32
    %3 = arith.cmpi ne, %2, %c0_i32_1 : i32
    %c0_i32_2 = arith.constant 0 : i32
    %4 = arith.cmpi slt, %2, %c0_i32_2 : i32
    %c0_i32_3 = arith.constant 0 : i32
    %5 = arith.cmpi slt, %1, %c0_i32_3 : i32
    %6 = arith.xori %4, %5 : i1
    %7 = arith.andi %6, %3 : i1
    %8 = arith.addi %2, %1 : i32
    %9 = arith.select %7, %8, %2 : i32
    %c1_i32_4 = arith.constant 1 : i32
    %c0_i32_5 = arith.constant 0 : i32
    %10 = arith.cmpi eq, %c1_i32_4, %c0_i32_5 : i32
    %c1_i32_6 = arith.constant 1 : i32
    %11 = arith.select %10, %c1_i32_6, %c1_i32_4 : i32
    %12 = arith.remsi %arg1, %11 : i32
    %c0_i32_7 = arith.constant 0 : i32
    %13 = arith.cmpi ne, %12, %c0_i32_7 : i32
    %c0_i32_8 = arith.constant 0 : i32
    %14 = arith.cmpi slt, %12, %c0_i32_8 : i32
    %c0_i32_9 = arith.constant 0 : i32
    %15 = arith.cmpi slt, %11, %c0_i32_9 : i32
    %16 = arith.xori %14, %15 : i1
    %17 = arith.andi %16, %13 : i1
    %18 = arith.addi %12, %11 : i32
    %19 = arith.select %17, %18, %12 : i32
    %c0_i32_10 = arith.constant 0 : i32
    return %9, %19 : i32, i32
  }
  func.func @transform_3(%arg0: i32, %arg1: i32) -> (i32, i32) {
    %c0_i32 = arith.constant 0 : i32
    %c0_i32_0 = arith.constant 0 : i32
    return %arg0, %c0_i32 : i32, i32
  }
  func.func @transform_4(%arg0: i32, %arg1: i32) -> (i32, i32) {
    %c0_i32 = arith.constant 0 : i32
    %c0_i32_0 = arith.constant 0 : i32
    return %arg0, %c0_i32 : i32, i32
  }
}

</mosaic_0001>

<bundles_post_ra>
// kernel: tpu_custom_call.1
= control target key start
LH: loop header
LB: loop body
LE: loop exit
PB: predicated region body
PF: predicated region fallthrough
CT: control target
= control target key end

     0   :  { %s1782_s15 = smov 0   ;;  %s1784_s16 = smov 0   ;;  %s2653_s0 = inlined_call_operand.vmem [shape: bf16[256,32], index: 0, kind: input, shape index: {}]   ;;  %s2654_s1 = inlined_call_operand.vmem [shape: bf16[256,32], index: 1, kind: input, shape index: {}]   ;;  %s2655_s2 = inlined_call_operand.vmem [shape: bf16[128,128], index: 2, kind: input, shape index: {}]   ;;  %s2656_s3 = inlined_call_operand.vmem [shape: f32[256,1], index: 3, kind: output, shape index: {0}]   ;;  %s2657_s4 = inlined_call_operand.vmem [shape: f32[256,1], index: 4, kind: output, shape index: {1}]  }
   0x1   :  { %s1786_s17 = smov 0   ;;  %s1788_s18 = smov 0  }
   0x2   :  { %s1790_s19 = smov 0  }
   0x3 LB: > { %s24_s20 = sadd.s32 1, %s1744_s17  ;;  %s27_s21 = sadd.s32 1, %s1748_s18  ;;  %s1752_s19 = sphi %s1790_s19, %s15_s19   ;;  %s1748_s18 = sphi %s1788_s18, %s2739_s18   ;;  %s1744_s17 = sphi %s1786_s17, %s2738_s17   ;;  %s1740_s16 = sphi %s1784_s16, %s2737_s16   ;;  %s1736_s15 = sphi %s1782_s15, %s2736_s15  }
   0x4   : > { %p25_p0 = scmp.ge.s32.totalorder %s24_s20, 2  ;;  %p1399_p1 = scmp.ge.s32.totalorder %s1752_s19, 1 }
   0x5   : > { %p189_p2 = scmp.lt.s32.totalorder %s1752_s19, 5 }
   0x6   : > { %s2741_s20 = smov (%p25_p0, %s24_s20), 0  ;;  %s2743_s21 = smov (!%p25_p0, %s27_s21), %s1748_s18 }
   0x7   : > { %p190_p3 = pnand %p1399_p1, %p189_p2  ;;  %p29_p4 = scmp.ge.s32.totalorder %s2743_s21, 2 }
   0x9   : > { %s2745_s21 = smov (%p29_p4, %s2743_s21), 0  ;;  %193 = sbr.rel (%p190_p3) target bundleno = 833 (0x341), region = 32 }
  0x10   : > { %s1400_s22 = sshll.u32 %s1740_s16, 4  ;;  %s1402_s23 = sshll.u32 %s1736_s15, 4 }
  0x11   : > { %p226_p5 = scmp.lt.s32.totalorder %s1400_s22, 31  ;;  %p232_p6 = scmp.lt.s32.totalorder %s1402_s23, 31 }
  0x12   : > { %p1408_p7 = scmp.ne.s32.totalorder %s1736_s15, 0 }
  0x13   : > { %s2747_s22 = smov (!%p226_p5, %s1400_s22), 31  ;;  %s2749_s23 = smov (!%p232_p6, %s1402_s23), 31 }
  0x14   : > { %s1401_s24 = sshll.u32 %s2747_s22, 2  ;;  %s1405_s25 = sshll.u32 %s2747_s22, 3  ;;  %vm254_vm0 = vcmask (!%p1408_p7), 7168   ;;  %v1754_v0 = vmov (!%p1408_p7), -1e+30   ;;  %v1755_v1 = vmov (!%p1408_p7), 0.0  }
  0x15   : > { %s1821_s28 = scalar_lea.vmem %s2653_s0, %s1401_s24  ;;  %s1403_s29 = sshll.u32 %s2749_s23, 2  ;;  %255 = vst.msk [vmem:[#allocation2] sm:$0xff] (!%p1408_p7), %vm254_vm0, %v1754_v0  ;;  %256 = vst.msk [vmem:[#allocation2 + $0x8] sm:$0xff] (!%p1408_p7), %vm254_vm0, %v1754_v0 }
  0x16   : > { %s1826_s6 = scalar_lea.vmem %s2654_s1, %s1403_s29  ;;  %s1831_s9 = scalar_lea.vmem %s2656_s3, %s1405_s25  ;;  %257 = vst.msk [vmem:[#allocation2 + $0x10] sm:$0xff] (!%p1408_p7), %vm254_vm0, %v1754_v0  ;;  %258 = vst.msk [vmem:[#allocation2 + $0x18] sm:$0xff] (!%p1408_p7), %vm254_vm0, %v1754_v0 }
  0x17   : > { %s1836_s12 = scalar_lea.vmem %s2657_s4, %s1405_s25  ;;  %253 = sbr.rel (%p1408_p7) target bundleno = 45 (0x2d), region = 36  ;;  %259 = vst.msk [vmem:[#allocation2 + $0x20] sm:$0xff] (!%p1408_p7), %vm254_vm0, %v1754_v0  ;;  %260 = vst.msk [vmem:[#allocation2 + $0x28] sm:$0xff] (!%p1408_p7), %vm254_vm0, %v1754_v0 }
  0x18   : > { %261 = vst.msk [vmem:[#allocation2 + $0x30] sm:$0xff] (!%p1408_p7), %vm254_vm0, %v1754_v0  ;;  %262 = vst.msk [vmem:[#allocation2 + $0x38] sm:$0xff] (!%p1408_p7), %vm254_vm0, %v1754_v0 }
  0x19   : > { %263 = vst.msk [vmem:[#allocation2 + $0x40] sm:$0xff] (!%p1408_p7), %vm254_vm0, %v1754_v0  ;;  %264 = vst.msk [vmem:[#allocation2 + $0x48] sm:$0xff] (!%p1408_p7), %vm254_vm0, %v1754_v0 }
  0x1a   : > { %265 = vst.msk [vmem:[#allocation2 + $0x50] sm:$0xff] (!%p1408_p7), %vm254_vm0, %v1754_v0  ;;  %266 = vst.msk [vmem:[#allocation2 + $0x58] sm:$0xff] (!%p1408_p7), %vm254_vm0, %v1754_v0 }
  0x1b   : > { %267 = vst.msk [vmem:[#allocation2 + $0x60] sm:$0xff] (!%p1408_p7), %vm254_vm0, %v1754_v0  ;;  %268 = vst.msk [vmem:[#allocation2 + $0x68] sm:$0xff] (!%p1408_p7), %vm254_vm0, %v1754_v0 }
  0x1c   : > { %269 = vst.msk [vmem:[#allocation2 + $0x70] sm:$0xff] (!%p1408_p7), %vm254_vm0, %v1754_v0  ;;  %270 = vst.msk [vmem:[#allocation2 + $0x78] sm:$0xff] (!%p1408_p7), %vm254_vm0, %v1754_v0 }
  0x1d   : > { %271 = vst.msk [vmem:[#allocation3] sm:$0xff] (!%p1408_p7), %vm254_vm0, %v1755_v1  ;;  %272 = vst.msk [vmem:[#allocation3 + $0x8] sm:$0xff] (!%p1408_p7), %vm254_vm0, %v1755_v1 }
  0x1e   : > { %273 = vst.msk [vmem:[#allocation3 + $0x10] sm:$0xff] %vm254_vm0, %v1755_v1  ;;  %274 = vst.msk [vmem:[#allocation3 + $0x18] sm:$0xff] %vm254_vm0, %v1755_v1 }
  0x1f   : > { %275 = vst.msk [vmem:[#allocation3 + $0x20] sm:$0xff] %vm254_vm0, %v1755_v1  ;;  %276 = vst.msk [vmem:[#allocation3 + $0x28] sm:$0xff] %vm254_vm0, %v1755_v1 }
  0x20   : > { %277 = vst.msk [vmem:[#allocation3 + $0x30] sm:$0xff] %vm254_vm0, %v1755_v1  ;;  %278 = vst.msk [vmem:[#allocation3 + $0x38] sm:$0xff] %vm254_vm0, %v1755_v1 }
  0x21   : > { %279 = vst.msk [vmem:[#allocation3 + $0x40] sm:$0xff] %vm254_vm0, %v1755_v1  ;;  %280 = vst.msk [vmem:[#allocation3 + $0x48] sm:$0xff] %vm254_vm0, %v1755_v1 }
  0x22   : > { %281 = vst.msk [vmem:[#allocation3 + $0x50] sm:$0xff] %vm254_vm0, %v1755_v1  ;;  %282 = vst.msk [vmem:[#allocation3 + $0x58] sm:$0xff] %vm254_vm0, %v1755_v1 }
  0x23   : > { %283 = vst.msk [vmem:[#allocation3 + $0x60] sm:$0xff] %vm254_vm0, %v1755_v1  ;;  %284 = vst.msk [vmem:[#allocation3 + $0x68] sm:$0xff] %vm254_vm0, %v1755_v1 }
  0x24   : > { %285 = vst.msk [vmem:[#allocation3 + $0x70] sm:$0xff] %vm254_vm0, %v1755_v1  ;;  %286 = vst.msk [vmem:[#allocation3 + $0x78] sm:$0xff] %vm254_vm0, %v1755_v1 }
  0x25   : > { %287 = vst.msk [vmem:[#allocation4] sm:$0xff] %vm254_vm0, %v1755_v1  ;;  %288 = vst.msk [vmem:[#allocation4 + $0x8] sm:$0xff] %vm254_vm0, %v1755_v1 }
  0x26   : > { %289 = vst.msk [vmem:[#allocation4 + $0x10] sm:$0xff] %vm254_vm0, %v1755_v1  ;;  %290 = vst.msk [vmem:[#allocation4 + $0x18] sm:$0xff] %vm254_vm0, %v1755_v1 }
  0x27   : > { %291 = vst.msk [vmem:[#allocation4 + $0x20] sm:$0xff] %vm254_vm0, %v1755_v1  ;;  %292 = vst.msk [vmem:[#allocation4 + $0x28] sm:$0xff] %vm254_vm0, %v1755_v1 }
  0x28   : > { %293 = vst.msk [vmem:[#allocation4 + $0x30] sm:$0xff] %vm254_vm0, %v1755_v1  ;;  %294 = vst.msk [vmem:[#allocation4 + $0x38] sm:$0xff] %vm254_vm0, %v1755_v1 }
  0x29   : > { %295 = vst.msk [vmem:[#allocation4 + $0x40] sm:$0xff] %vm254_vm0, %v1755_v1  ;;  %296 = vst.msk [vmem:[#allocation4 + $0x48] sm:$0xff] %vm254_vm0, %v1755_v1 }
  0x2a   : > { %297 = vst.msk [vmem:[#allocation4 + $0x50] sm:$0xff] %vm254_vm0, %v1755_v1  ;;  %298 = vst.msk [vmem:[#allocation4 + $0x58] sm:$0xff] %vm254_vm0, %v1755_v1 }
  0x2b   : > { %299 = vst.msk [vmem:[#allocation4 + $0x60] sm:$0xff] %vm254_vm0, %v1755_v1  ;;  %300 = vst.msk [vmem:[#allocation4 + $0x68] sm:$0xff] %vm254_vm0, %v1755_v1 }
  0x2c   : > { %301 = vst.msk [vmem:[#allocation4 + $0x70] sm:$0xff] %vm254_vm0, %v1755_v1  ;;  %302 = vst.msk [vmem:[#allocation4 + $0x78] sm:$0xff] %vm254_vm0, %v1755_v1 }
  0x2d PF: > { %v1602_v2 = vld [vmem:[%s1826_s6] sm:$0xff]   ;;  %vm415_vm1 = vcmask 261120   ;;  %v1603_v3 = vld [vmem:[%s1826_s6 + $0x8] sm:$0xff]   ;;  %v1604_v5 = vld [vmem:[%s1826_s6 + $0x10] sm:$0xff]   ;;  %v642_v26 = vlaneseq  ;;  %s1433_s13 = sshll.u32 %s1740_s16, 7  ;;  %s1434_s14 = sshll.u32 %s1736_s15, 7 }
  0x2e   : > { %1541 = vmatprep.subr.msk.bf16.mxu0 %vm415_vm1, %v1602_v2  ;;  %1542 = vmatprep.subr.msk.bf16.mxu1 %vm415_vm1, %v1602_v2  ;;  %v441_v4 = vsel %vm415_vm1, %v1602_v2, 0  ;;  %v444_v6 = vsel %vm415_vm1, %v1603_v3, 0  ;;  %v1610_v7 = vld [vmem:[%s1821_s28] sm:$0xff]   ;;  %v447_v9 = vsel %vm415_vm1, %v1604_v5, 0  ;;  %v1605_v10 = vld [vmem:[%s1826_s6 + $0x18] sm:$0xff]   ;;  %v1607_v14 = vld [vmem:[%s1826_s6 + $0x28] sm:$0xff]   ;;  %v1942_v30 = vstv %s1433_s13 }
  0x2f   : > { %1494 = vmatpush3.bf16.xpose.msra.mxu0 %v441_v4  ;;  %1533 = vmatpush3.bf16.xpose.msra.mxu1 %v441_v4  ;;  %v1611_v8 = vld [vmem:[%s1821_s28 + $0x20] sm:$0xff]   ;;  %v450_v11 = vsel %vm415_vm1, %v1605_v10, 0  ;;  %v456_v15 = vsel %vm415_vm1, %v1607_v14, 0  ;;  %v1608_v16 = vld [vmem:[%s1826_s6 + $0x30] sm:$0xff]   ;;  %v1609_v18 = vld [vmem:[%s1826_s6 + $0x38] sm:$0xff]   ;;  %v1935_v27 = vshrl.u32 %v642_v26, 7  ;;  %v679_v31 = vstv %s1434_s14 }
  0x30   : > { %1543 = vmatprep.subr.msk.bf16.mxu0 %vm415_vm1, %v1603_v3  ;;  %1544 = vmatprep.subr.msk.bf16.mxu1 %vm415_vm1, %v1603_v3  ;;  %v1606_v12 = vld [vmem:[%s1826_s6 + $0x20] sm:$0xff]   ;;  %v459_v17 = vsel %vm415_vm1, %v1608_v16, 0  ;;  %v462_v19 = vsel %vm415_vm1, %v1609_v18, 0  ;;  %v1612_v20 = vld [vmem:[%s1821_s28 + $0x8] sm:$0xff]   ;;  %v1614_v22 = vld [vmem:[%s1821_s28 + $0x10] sm:$0xff]   ;;  %v1940_v29 = vand.u32 127, %v642_v26 }
  0x31   : > { %1509 = vmatprep.mubr.msk.bf16.mxu0 %vm415_vm1, %v1610_v7  ;;  %1517 = vmatprep.mubr.msk.bf16.mxu1 %vm415_vm1, %v1611_v8  ;;  %v453_v13 = vsel %vm415_vm1, %v1606_v12, 0  ;;  %v1613_v21 = vld [vmem:[%s1821_s28 + $0x28] sm:$0xff]   ;;  %v1616_v23 = vld [vmem:[%s1821_s28 + $0x30] sm:$0xff]   ;;  %v1615_v24 = vld [vmem:[%s1821_s28 + $0x18] sm:$0xff]   ;;  %v653_v28 = vadd.s32 80, %v1935_v27  ;;  %v646_v32 = vadd.s32 24, %v1935_v27  ;;  %v660_v47 = vadd.s32 %v1942_v30, %v1935_v27 }
  0x32   : > { %v1617_v25 = vld [vmem:[%s1821_s28 + $0x38] sm:$0xff]   ;;  %v654_v33 = vadd.s32 88, %v1935_v27  ;;  %v652_v34 = vadd.s32 72, %v1935_v27  ;;  %v1949_v36 = vadd.s32 %v679_v31, %v1940_v29  ;;  %v645_v37 = vadd.s32 16, %v1935_v27  ;;  %v1973_v46 = vld [vmem:[%s2655_s2 + $0x8] sm:$0xff]   ;;  %v1989_v50 = vld [vmem:[%s2655_s2 + $0x20] sm:$0xff]  }
  0x33   : > { %v670_v35 = vadd.s32 %v1942_v30, %v653_v28  ;;  %v644_v38 = vadd.s32 8, %v1935_v27  ;;  %v663_v39 = vadd.s32 %v1942_v30, %v646_v32  ;;  %vm697_vm3 = vcmp.ge.s32.totalorder %v1940_v29, 16  ;;  %v1994_v51 = vld [vmem:[%s2655_s2 + $0x28] sm:$0xff]   ;;  %v2006_v54 = vld [vmem:[%s2655_s2] sm:$0xff]   ;;  %v2052_v7 = vld [vmem:[%s2655_s2 + $0x10] sm:$0xff]   ;;  %p1435_p8 = scmp.ne.s32.totalorder %s1736_s15, 1 }
  0x34   : > { %v671_v40 = vadd.s32 %v1942_v30, %v654_v33  ;;  %v669_v41 = vadd.s32 %v1942_v30, %v652_v34  ;;  %v662_v42 = vadd.s32 %v1942_v30, %v645_v37  ;;  %v651_v45 = vadd.s32 64, %v1935_v27  ;;  %v2057_v8 = vld [vmem:[%s2655_s2 + $0x18] sm:$0xff]  }
  0x35   : > { %vm691_vm2 = vcmp.eq.s32.totalorder %v670_v35, %v1949_v36  ;;  %v661_v43 = vadd.s32 %v1942_v30, %v644_v38  ;;  %vm684_vm4 = vcmp.eq.s32.totalorder %v663_v39, %v1949_v36  ;;  %v648_v49 = vadd.s32 40, %v1935_v27  ;;  %v2305_v44 = vld [vmem:[#allocation2 + $0x18] sm:$0xff] }
  0x36   : > { %vm692_vm5 = vcmp.eq.s32.totalorder %v671_v40, %v1949_v36  ;;  %vm1964_vm6 = vmor %vm691_vm2, %vm697_vm3  ;;  %vm690_vm7 = vcmp.eq.s32.totalorder %v669_v41, %v1949_v36  ;;  %vm683_vm8 = vcmp.eq.s32.totalorder %v662_v42, %v1949_v36  ;;  %v650_v53 = vadd.s32 56, %v1935_v27 }
  0x37   : > { %1496 = vmatpush3.bf16.xpose.msra.mxu0 %v444_v6  ;;  %1534 = vmatpush3.bf16.xpose.msra.mxu1 %v444_v6  ;;  %vm1980_vm9 = vmor %vm684_vm4, %vm697_vm3  ;;  %vm682_vm10 = vcmp.eq.s32.totalorder %v661_v43, %v1949_v36  ;;  %v1445_v55 = vunpack.c.h.bf16 %v1973_v46  ;;  %v1457_v56 = vunpack.c.h.bf16 %v1989_v50  ;;  %v1461_v57 = vunpack.c.h.bf16 %v1994_v51 }
  0x38   : > { %1545 = vmatprep.subr.msk.bf16.mxu0 %vm415_vm1, %v1604_v5  ;;  %1546 = vmatprep.subr.msk.bf16.mxu1 %vm415_vm1, %v1604_v5  ;;  %vm1998_vm11 = vmor %vm692_vm5, %vm697_vm3  ;;  %v1441_v59 = vunpack.c.h.bf16 %v2006_v54  ;;  %vm681_vm15 = vcmp.eq.s32.totalorder %v660_v47, %v1949_v36  ;;  %v668_v62 = vadd.s32 %v1942_v30, %v651_v45  ;;  %v665_v63 = vadd.s32 %v1942_v30, %v648_v49 }
  0x39   : > { %vm2015_vm12 = vmor %vm690_vm7, %vm697_vm3  ;;  %v667_v0 = vadd.s32 %v1942_v30, %v650_v53  ;;  %v735_v1 = vsel %vm1980_vm9, 0.0, %v1445_v55  ;;  %v743_v3 = vsel %vm1998_vm11, 0.0, %v1461_v57  ;;  %v649_v6 = vadd.s32 48, %v1935_v27 }
  0x3a   : > { %vm2022_vm13 = vmor %vm682_vm10, %vm697_vm3  ;;  %v741_v2 = vsel %vm2015_vm12, 0.0, %v1457_v56  ;;  %vm686_vm2 = vcmp.eq.s32.totalorder %v665_v63, %v1949_v36  ;;  %v655_v42 = vadd.s32 96, %v1935_v27  ;;  %v656_v63 = vadd.s32 104, %v1935_v27 }
  0x3b   : > { %vm2030_vm14 = vmor %vm683_vm8, %vm697_vm3  ;;  %vm688_vm4 = vcmp.eq.s32.totalorder %v667_v0, %v1949_v36  ;;  %v666_v32 = vadd.s32 %v1942_v30, %v649_v6  ;;  %v1444_v35 = vunpack.c.l.bf16 %v1973_v46 }
  0x3c   : > { %vm2081_vm0 = vmor %vm681_vm15, %vm697_vm3 }
  0x3d   : > { %vm2114_vm5 = vmor %vm686_vm2, %vm697_vm3 }
  0x3e   : > { %vm2132_vm8 = vmor %vm688_vm4, %vm697_vm3 }
  0x3f   : > { %1498 = vmatpush3.bf16.xpose.msra.mxu0 %v447_v9  ;;  %1535 = vmatpush3.bf16.xpose.msra.mxu1 %v447_v9  ;;  %v733_v9 = vsel %vm2022_vm13, 0.0, %v1441_v59 }
  0x40   : > { %1547 = vmatprep.subr.msk.bf16.mxu0 %vm415_vm1, %v1605_v10  ;;  %1548 = vmatprep.subr.msk.bf16.mxu1 %vm415_vm1, %v1605_v10 }
  0x47   : > { %1500 = vmatpush3.bf16.xpose.msra.mxu0 %v450_v11  ;;  %1536 = vmatpush3.bf16.xpose.msra.mxu1 %v450_v11 }
  0x48   : > { %1549 = vmatprep.subr.msk.bf16.mxu0 %vm415_vm1, %v1606_v12  ;;  %1550 = vmatprep.subr.msk.bf16.mxu1 %vm415_vm1, %v1606_v12 }
  0x4f   : > { %1502 = vmatpush3.bf16.xpose.msra.mxu0 %v453_v13  ;;  %1537 = vmatpush3.bf16.xpose.msra.mxu1 %v453_v13 }
  0x50   : > { %1551 = vmatprep.subr.msk.bf16.mxu0 %vm415_vm1, %v1607_v14  ;;  %1552 = vmatprep.subr.msk.bf16.mxu1 %vm415_vm1, %v1607_v14 }
  0x57   : > { %1504 = vmatpush3.bf16.xpose.msra.mxu0 %v456_v15  ;;  %1538 = vmatpush3.bf16.xpose.msra.mxu1 %v456_v15 }
  0x58   : > { %1553 = vmatprep.subr.msk.bf16.mxu0 %vm415_vm1, %v1608_v16  ;;  %1554 = vmatprep.subr.msk.bf16.mxu1 %vm415_vm1, %v1608_v16 }
  0x5f   : > { %1506 = vmatpush3.bf16.xpose.msra.mxu0 %v459_v17  ;;  %1539 = vmatpush3.bf16.xpose.msra.mxu1 %v459_v17  ;;  %v647_v17 = vadd.s32 32, %v1935_v27 }
  0x60   : > { %1555 = vmatprep.subr.msk.bf16.mxu0 %vm415_vm1, %v1609_v18  ;;  %1556 = vmatprep.subr.msk.bf16.mxu1 %vm415_vm1, %v1609_v18 }
  0x61   : > { %v664_v37 = vadd.s32 %v1942_v30, %v647_v17 }
  0x67   : > { %1508 = vmatpush3.bf16.xpose.msra.mxu0 %v462_v19  ;;  %1540 = vmatpush3.bf16.xpose.msra.mxu1 %v462_v19 }
  0x6e   : > { %1510 = vmatmul.mubr.msk.bf16.vlgmr.msra.gmra.mrb[0].mxu0 %vm415_vm1, %v1612_v20  ;;  %1518 = vmatmul.mubr.msk.bf16.vlgmr.msra.gmra.mrb[0].mxu1 %vm415_vm1, %v1613_v21  ;;  %v658_v20 = vadd.s32 120, %v1935_v27 }
  0x6f   : > { %1513 = vmatprep.mubr.msk.bf16.mxu0 %vm415_vm1, %v1614_v22  ;;  %1521 = vmatprep.mubr.msk.bf16.mxu1 %vm415_vm1, %v1616_v23  ;;  %v1449_v23 = vunpack.c.h.bf16 %v2052_v7 }
  0x70   : > { %v675_v41 = vadd.s32 %v1942_v30, %v658_v20 }
  0x71   : > { %v737_v40 = vsel %vm2114_vm5, 0.0, %v1449_v23  ;;  %v630_v23 = vld [vmem:[#allocation4 + $0x28] sm:$0xff] }
  0x72   : > { %vm696_vm15 = vcmp.eq.s32.totalorder %v675_v41, %v1949_v36 }
  0x76   : > { %1514 = vmatmul.mubr.msk.bf16.gmra.mrb[4].mxu0 %vm415_vm1, %v1615_v24  ;;  %1522 = vmatmul.mubr.msk.bf16.gmra.mrb[4].mxu1 %vm415_vm1, %v1617_v25  ;;  %vm689_vm1 = vcmp.eq.s32.totalorder %v668_v62, %v1949_v36  ;;  %v1453_v25 = vunpack.c.h.bf16 %v2057_v8 }
  0x77   : > { %vm2124_vm7 = vmor %vm689_vm1, %vm697_vm3 }
  0x78   : > { %v739_v43 = vsel %vm2132_vm8, 0.0, %v1453_v25  ;;  %v1440_v25 = vunpack.c.l.bf16 %v2006_v54 }
  0x7a   : > { %v732_v33 = vsel %vm2081_vm0, 0.0, %v1440_v25  ;;  %v2423_v25 = vld [vmem:[#allocation2 + $0x68] sm:$0xff] }
  0x7b   : > { %2708 = vst [vmem:[#allocation13_spill] sm:$0xff] %v2423_v25 }
 0x141   : > { %v2044_v4 = vpop.f32.mrb[0].mxu0  ;;  %v2046_v5 = vpop.f32.mrb[0].mxu1 }
 0x142   : > { %v2061_v10 = vpop.f32.mrb[1].mxu0  ;;  %v2063_v11 = vpop.f32.mrb[1].mxu1  ;;  %v2068_v12 = vsel %vm1964_vm6, -1e+30, %v2046_v5  ;;  %v2073_v13 = vsel %vm2030_vm14, -1e+30, %v2044_v4 }
 0x143   : > { %768 = vmax.xlane.f32.xlu0 %v2068_v12  ;;  %v1520_v14 = vpop.f32.mrb[2].mxu1  ;;  %752 = vmax.xlane.f32.xlu1 %v2073_v13  ;;  %v1512_v15 = vpop.f32.mrb[2].mxu0  ;;  %v2103_v28 = vsel %vm2081_vm0, -1e+30, %v2061_v10  ;;  %v2150_v45 = vsel %vm2124_vm7, -1e+30, %v2063_v11  ;;  %v1069_v54 = vmul.f32 %v732_v33, %v2061_v10  ;;  %v1456_v10 = vunpack.c.l.bf16 %v1989_v50 }
 0x144   : > { %v501_v18 = vpop.f32.mrb[3].mxu0  ;;  %v533_v19 = vpop.f32.mrb[3].mxu1  ;;  %v2090_v21 = vmul.f32 %v1512_v15, %v735_v1  ;;  %v2092_v22 = vmul.f32 %v1520_v14, %v743_v3  ;;  %v2107_v31 = vsel %vm1980_vm9, -1e+30, %v1512_v15  ;;  %v2154_v47 = vsel %vm1998_vm11, -1e+30, %v1520_v14 }
 0x145   : > { %v2095_v24 = vmul.f32 %v733_v9, %v501_v18  ;;  %v2098_v26 = vmul.f32 %v741_v2, %v533_v19  ;;  %vm687_vm9 = vcmp.eq.s32.totalorder %v666_v32, %v1949_v36  ;;  %vm685_vm11 = vcmp.eq.s32.totalorder %v664_v37, %v1949_v36  ;;  %v2295_v50 = vld [vmem:[#allocation2 + $0x10] sm:$0xff]  ;;  %v625_v33 = vld [vmem:[#allocation4] sm:$0xff] }
 0x146   : > { %vm2169_vm10 = vmor %vm687_vm9, %vm697_vm3  ;;  %v2180_v0 = vsel %vm2015_vm12, -1e+30, %v533_v19  ;;  %v2184_v1 = vsel %vm2022_vm13, -1e+30, %v501_v18  ;;  %v672_v2 = vadd.s32 %v1942_v30, %v655_v42  ;;  %v657_v3 = vadd.s32 112, %v1935_v27  ;;  %v626_v27 = vld [vmem:[#allocation4 + $0x8] sm:$0xff] }
 0x147   : > { %748 = vmax.xlane.f32.xlu0 %v2103_v28  ;;  %754 = vmax.xlane.f32.xlu1 %v2107_v31  ;;  %vm2201_vm12 = vmor %vm685_vm11, %vm697_vm3  ;;  %v673_v9 = vadd.s32 %v1942_v30, %v656_v63  ;;  %v1756_v18 = vmov 0   ;;  %v734_v37 = vsel %vm2030_vm14, 0.0, %v1444_v35  ;;  %v1452_v42 = vunpack.c.l.bf16 %v2057_v8 }
 0x148   : > { %vm2207_vm13 = vmor %vm696_vm15, %vm697_vm3  ;;  %vm693_vm1 = vcmp.eq.s32.totalorder %v672_v2, %v1949_v36  ;;  %v674_v14 = vadd.s32 %v1942_v30, %v657_v3  ;;  %1600 = vset.pattern.permute.xlu1 %v1756_v18  ;;  %1601 = vset.pattern.permute.xlu0 %v1756_v18  ;;  %v1071_v41 = vmul.f32 %v2044_v4, %v734_v37  ;;  %v1460_v4 = vunpack.c.l.bf16 %v1994_v51  ;;  %v2324_v18 = vld [vmem:[#allocation2 + $0x58] sm:$0xff] }
 0x149   : > { %v2137_v38 = vpop.f32.mrb[4].mxu0  ;;  %v2139_v39 = vpop.f32.mrb[4].mxu1  ;;  %vm2227_vm2 = vmor %vm693_vm1, %vm697_vm3  ;;  %vm694_vm4 = vcmp.eq.s32.totalorder %v673_v9, %v1949_v36 }
 0x14a   : > { %v514_v48 = vpop.f32.mrb[5].mxu0  ;;  %v2157_v49 = vpop.f32.mrb[5].mxu1  ;;  %v2193_v6 = vsel %vm2169_vm10, -1e+30, %v2137_v38  ;;  %vm2242_vm9 = vmor %vm694_vm4, %vm697_vm3  ;;  %v742_v8 = vsel %vm1964_vm6, 0.0, %v1460_v4  ;;  %v2361_v4 = vld [vmem:[#allocation2 + $0x30] sm:$0xff] }
 0x14b   : > { %764 = vmax.xlane.f32.xlu0 %v2150_v45  ;;  %770 = vmax.xlane.f32.xlu1 %v2154_v47  ;;  %v1516_v53 = vpop.f32.mrb[6].mxu0  ;;  %v2161_v55 = vpop.f32.mrb[6].mxu1  ;;  %v2218_v15 = vsel %vm2201_vm12, -1e+30, %v514_v48  ;;  %v2238_v19 = vsel %vm2227_vm2, -1e+30, %v2157_v49 }
 0x14c   : > { %v517_v56 = vpop.f32.mrb[7].mxu0  ;;  %v2163_v57 = vpop.f32.mrb[7].mxu1  ;;  %v2165_v59 = vmul.f32 %v1516_v53, %v739_v43  ;;  %v2197_v58 = vsel %vm2132_vm8, -1e+30, %v1516_v53  ;;  %v2223_v17 = vsel %vm2207_vm13, -1e+30, %v2161_v55  ;;  %vm695_vm8 = vcmp.eq.s32.totalorder %v674_v14, %v1949_v36 }
 0x14d   : > { %v2173_v62 = vmul.f32 %v737_v40, %v517_v56  ;;  %vm2248_vm11 = vmor %vm695_vm8, %vm697_vm3  ;;  %v2254_v36 = vsel %vm2114_vm5, -1e+30, %v517_v56  ;;  %v2267_v29 = vsel %vm2242_vm9, -1e+30, %v2163_v57  ;;  %v1448_v40 = vunpack.c.l.bf16 %v2052_v7  ;;  %v2293_v56 = vld [vmem:[#allocation2 + $0x50] sm:$0xff]  ;;  %v2322_v14 = vld [vmem:[#allocation2 + $0x40] sm:$0xff] }
 0x14e   : > { %v2262_v32 = vsel %vm2248_vm11, -1e+30, %v2139_v39  ;;  %v738_v43 = vsel %vm2169_vm10, 0.0, %v1452_v42  ;;  %v740_v7 = vsel %vm2124_vm7, 0.0, %v1456_v10  ;;  %vm1036_vm3 = vcmask 7168  }
 0x14f   : > { %766 = vmax.xlane.f32.xlu1 %v2180_v0  ;;  %750 = vmax.xlane.f32.xlu0 %v2184_v1  ;;  %v736_v16 = vsel %vm2201_vm12, 0.0, %v1448_v40  ;;  %v1075_v61 = vmul.f32 %v2137_v38, %v738_v43  ;;  %v1077_v53 = vmul.f32 %v740_v7, %v2063_v11  ;;  %v2303_v11 = vld [vmem:[#allocation2] sm:$0xff] }
 0x150   : > { %v1073_v46 = vmul.f32 %v736_v16, %v514_v48  ;;  %v1079_v48 = vmul.f32 %v2046_v5, %v742_v8  ;;  %v2344_v16 = vld [vmem:[#allocation2 + $0x8] sm:$0xff]  ;;  %v2421_v5 = vld [vmem:[#allocation2 + $0x70] sm:$0xff] }
 0x151   : > { %2707 = vst [vmem:[#allocation12_spill] sm:$0xff] %v2421_v5 }
 0x153   : > { %760 = vmax.xlane.f32.xlu0 %v2193_v6  ;;  %762 = vmax.xlane.f32.xlu1 %v2197_v58 }
 0x157   : > { %756 = vmax.xlane.f32.xlu0 %v2218_v15  ;;  %778 = vmax.xlane.f32.xlu1 %v2223_v17 }
 0x15b   : > { %772 = vmax.xlane.f32.xlu0 %v2238_v19  ;;  %758 = vmax.xlane.f32.xlu1 %v2254_v36 }
 0x15f   : > { %776 = vmax.xlane.f32.xlu0 %v2262_v32  ;;  %774 = vmax.xlane.f32.xlu1 %v2267_v29 }
 0x163   : > { %1085 = vadd.xlane.f32.xlu0 %v1069_v54 }
 0x167   : > { %1089 = vadd.xlane.f32.xlu0 %v1071_v41  ;;  %v2342_v41 = vld [vmem:[#allocation2 + $0x48] sm:$0xff] }
 0x16b   : > { %1093 = vadd.xlane.f32.xlu0 %v1073_v46  ;;  %v2403_v46 = vld [vmem:[#allocation2 + $0x28] sm:$0xff] }
 0x16c   : > { %2705 = vst [vmem:[#allocation10_spill] sm:$0xff] %v2403_v46 }
 0x16f   : > { %1097 = vadd.xlane.f32.xlu0 %v1075_v61 }
 0x173   : > { %1101 = vadd.xlane.f32.xlu0 %v1077_v53  ;;  %v2363_v53 = vld [vmem:[#allocation2 + $0x38] sm:$0xff] }
 0x177   : > { %1105 = vadd.xlane.f32.xlu0 %v1079_v48  ;;  %v2401_v48 = vld [vmem:[#allocation2 + $0x60] sm:$0xff] }
 0x178   : > { %2704 = vst [vmem:[#allocation9_spill] sm:$0xff] %v2401_v48 }
 0x1d0   : > { %v769_v38 = vpop.xlane.xlu0 %768  ;;  %v753_v34 = vpop.xlane.xlu1 %752 }
 0x1d1   : > { %v2298_v52 = vmax.f32 %v2293_v56, %v769_v38  ;;  %v2301_v51 = vmax.f32 %v2295_v50, %v753_v34 }
 0x1d3   : > { %1063 = vst.msk [vmem:[#allocation2 + $0x50] sm:$0xff] %vm1036_vm3, %v2298_v52  ;;  %1055 = vst.msk [vmem:[#allocation2 + $0x10] sm:$0xff] %vm1036_vm3, %v2301_v51  ;;  %872 = vperm.xlu1 %1600, %v2301_v51  }
 0x1d4   : > { %v749_v2 = vpop.xlane.xlu0 %748  ;;  %v755_v3 = vpop.xlane.xlu1 %754 }
 0x1d5   : > { %v2317_v60 = vmax.f32 %v2303_v11, %v749_v2  ;;  %v2320_v9 = vmax.f32 %v2305_v44, %v755_v3 }
 0x1d7   : > { %1053 = vst.msk [vmem:[#allocation2] sm:$0xff] %vm1036_vm3, %v2317_v60  ;;  %1056 = vst.msk [vmem:[#allocation2 + $0x18] sm:$0xff] %vm1036_vm3, %v2320_v9  ;;  %862 = vperm.xlu0 %1601, %v2317_v60   ;;  %912 = vperm.xlu1 %1600, %v2298_v52  }
 0x1d8   : > { %v765_v35 = vpop.xlane.xlu0 %764  ;;  %v771_v54 = vpop.xlane.xlu1 %770 }
 0x1d9   : > { %v2337_v37 = vmax.f32 %v2322_v14, %v765_v35  ;;  %v2340_v40 = vmax.f32 %v2324_v18, %v771_v54  ;;  %v2381_v35 = vld [vmem:[#allocation2 + $0x20] sm:$0xff]  ;;  %v2383_v54 = vld [vmem:[#allocation2 + $0x78] sm:$0xff] }
 0x1da   : > { %2700 = vst [vmem:[#allocation5_spill] sm:$0xff] %v2381_v35  ;;  %2701 = vst [vmem:[#allocation6_spill] sm:$0xff] %v2383_v54 }
 0x1db   : > { %1061 = vst.msk [vmem:[#allocation2 + $0x40] sm:$0xff] %vm1036_vm3, %v2337_v37  ;;  %1064 = vst.msk [vmem:[#allocation2 + $0x58] sm:$0xff] %vm1036_vm3, %v2340_v40  ;;  %902 = vperm.xlu1 %1600, %v2337_v37  }
 0x1dc   : > { %v767_v43 = vpop.xlane.xlu1 %766  ;;  %v751_v10 = vpop.xlane.xlu0 %750 }
 0x1dd   : > { %v2356_v61 = vmax.f32 %v2342_v41, %v767_v43  ;;  %v2359_v7 = vmax.f32 %v2344_v16, %v751_v10 }
 0x1df   : > { %1062 = vst.msk [vmem:[#allocation2 + $0x48] sm:$0xff] %vm1036_vm3, %v2356_v61  ;;  %1054 = vst.msk [vmem:[#allocation2 + $0x8] sm:$0xff] %vm1036_vm3, %v2359_v7  ;;  %907 = vperm.xlu0 %1601, %v2356_v61   ;;  %877 = vperm.xlu1 %1600, %v2320_v9  }
 0x1e0   : > { %v761_v38 = vpop.xlane.xlu0 %760  ;;  %v763_v34 = vpop.xlane.xlu1 %762 }
 0x1e1   : > { %v2376_v2 = vmax.f32 %v2361_v4, %v761_v38  ;;  %v2379_v3 = vmax.f32 %v2363_v53, %v763_v34 }
 0x1e3   : > { %1059 = vst.msk [vmem:[#allocation2 + $0x30] sm:$0xff] %vm1036_vm3, %v2376_v2  ;;  %1060 = vst.msk [vmem:[#allocation2 + $0x38] sm:$0xff] %vm1036_vm3, %v2379_v3  ;;  %917 = vperm.xlu0 %1601, %v2340_v40   ;;  %867 = vperm.xlu1 %1600, %v2359_v7  }
 0x1e4   : > { %v757_v38 = vpop.xlane.xlu0 %756  ;;  %v779_v34 = vpop.xlane.xlu1 %778 }
 0x1e5   : > { %v2396_v8 = vmax.f32 %v2381_v35, %v757_v38  ;;  %v2399_v43 = vmax.f32 %v2383_v54, %v779_v34  ;;  %v631_v54 = vld [vmem:[#allocation4 + $0x30] sm:$0xff] }
 0x1e7   : > { %2702 = vst [vmem:[#allocation7_spill] sm:$0xff] %v2396_v8  ;;  %2703 = vst [vmem:[#allocation8_spill] sm:$0xff] %v2399_v43  ;;  %937 = vperm.xlu0 %1601, %v2399_v43   ;;  %892 = vperm.xlu1 %1600, %v2376_v2  }
 0x1e8   : > { %1057 = vst.msk [vmem:[#allocation2 + $0x20] sm:$0xff] %vm1036_vm3, %v2396_v8  ;;  %1068 = vst.msk [vmem:[#allocation2 + $0x78] sm:$0xff] %vm1036_vm3, %v2399_v43  ;;  %v773_v38 = vpop.xlane.xlu0 %772  ;;  %v759_v34 = vpop.xlane.xlu1 %758 }
 0x1e9   : > { %v2416_v42 = vmax.f32 %v2401_v48, %v773_v38  ;;  %v2419_v10 = vmax.f32 %v2403_v46, %v759_v34  ;;  %v629_v46 = vld [vmem:[#allocation4 + $0x20] sm:$0xff] }
 0x1eb   : > { %2706 = vst [vmem:[#allocation11_spill] sm:$0xff] %v2416_v42  ;;  %1065 = vst.msk [vmem:[#allocation2 + $0x60] sm:$0xff] %vm1036_vm3, %v2416_v42  ;;  %882 = vperm.xlu1 %1600, %v2396_v8   ;;  %v627_v8 = vld [vmem:[#allocation4 + $0x10] sm:$0xff] }
 0x1ec   : > { %1058 = vst.msk [vmem:[#allocation2 + $0x28] sm:$0xff] %vm1036_vm3, %v2419_v10  ;;  %v777_v38 = vpop.xlane.xlu0 %776  ;;  %v775_v34 = vpop.xlane.xlu1 %774 }
 0x1ed   : > { %v2435_v35 = vmax.f32 %v2421_v5, %v777_v38  ;;  %v2438_v43 = vmax.f32 %v2423_v25, %v775_v34 }
 0x1ef   : > { %2709 = vst [vmem:[#allocation14_spill] sm:$0xff] %v2438_v43  ;;  %1067 = vst.msk [vmem:[#allocation2 + $0x70] sm:$0xff] %vm1036_vm3, %v2435_v35  ;;  %922 = vperm.xlu1 %1600, %v2416_v42   ;;  %927 = vperm.xlu0 %1601, %v2438_v43   ;;  %v633_v42 = vld [vmem:[#allocation4 + $0x40] sm:$0xff] }
 0x1f0   : > { %1066 = vst.msk [vmem:[#allocation2 + $0x68] sm:$0xff] %vm1036_vm3, %v2438_v43  ;;  %v1086_v38 = vpop.xlane.xlu0 %1085 }
 0x1f1   : > { %v1117_v34 = vadd.f32 %v1086_v38, %v625_v33 }
 0x1f3   : > { %1133 = vst.msk [vmem:[#allocation4] sm:$0xff] %vm1036_vm3, %v1117_v34  ;;  %897 = vperm.xlu1 %1600, %v2379_v3  }
 0x1f4   : > { %v1090_v48 = vpop.xlane.xlu0 %1089 }
 0x1f5   : > { %v1119_v5 = vadd.f32 %v1090_v48, %v627_v8  ;;  %v635_v8 = vld [vmem:[#allocation4 + $0x50] sm:$0xff] }
 0x1f7   : > { %1135 = vst.msk [vmem:[#allocation4 + $0x10] sm:$0xff] %vm1036_vm3, %v1119_v5  ;;  %887 = vperm.xlu1 %1600, %v2419_v10   ;;  %v1475_v5 = vld [vmem:[%s2655_s2 + $0x30] sm:$0xff]  }
 0x1f8   : > { %v1094_v63 = vpop.xlane.xlu0 %1093  ;;  %v1464_v48 = vunpack.c.l.bf16 %v1475_v5 }
 0x1f9   : > { %v1121_v25 = vadd.f32 %v1094_v63, %v629_v46 }
 0x1fb   : > { %1137 = vst.msk [vmem:[#allocation4 + $0x20] sm:$0xff] %vm1036_vm3, %v1121_v25  ;;  %932 = vperm.xlu1 %1600, %v2435_v35   ;;  %v744_v25 = vsel %vm2227_vm2, 0.0, %v1464_v48 }
 0x1fc   : > { %v1098_v33 = vpop.xlane.xlu0 %1097 }
 0x1fd   : > { %v1123_v38 = vadd.f32 %v1098_v33, %v631_v54  ;;  %v1081_v54 = vmul.f32 %v744_v25, %v2157_v49 }
 0x1ff   : > { %1139 = vst.msk [vmem:[#allocation4 + $0x30] sm:$0xff] %vm1036_vm3, %v1123_v38 }
 0x200   : > { %v1102_v34 = vpop.xlane.xlu0 %1101 }
 0x201   : > { %v1125_v43 = vadd.f32 %v1102_v34, %v633_v42  ;;  %v1465_v42 = vunpack.c.h.bf16 %v1475_v5 }
 0x203   : > { %1141 = vst.msk [vmem:[#allocation4 + $0x40] sm:$0xff] %vm1036_vm3, %v1125_v43  ;;  %v745_v43 = vsel %vm2242_vm9, 0.0, %v1465_v42 }
 0x204   : > { %v1106_v63 = vpop.xlane.xlu0 %1105  ;;  %v1082_v30 = vmul.f32 %v745_v43, %v2163_v57 }
 0x205   : > { %v1127_v46 = vadd.f32 %v1106_v63, %v635_v8 }
 0x207   : > { %1143 = vst.msk [vmem:[#allocation4 + $0x50] sm:$0xff] %vm1036_vm3, %v1127_v46 }
 0x20e   : > { %1109 = vadd.xlane.f32.xlu0 %v1081_v54 }
 0x21f   : > { %1087 = vadd.xlane.f32.xlu1 %v2095_v24 }
 0x223   : > { %1091 = vadd.xlane.f32.xlu1 %v2090_v21 }
 0x227   : > { %1095 = vadd.xlane.f32.xlu1 %v2173_v62 }
 0x22b   : > { %1099 = vadd.xlane.f32.xlu1 %v2165_v59 }
 0x22f   : > { %1103 = vadd.xlane.f32.xlu1 %v2098_v26 }
 0x233   : > { %1107 = vadd.xlane.f32.xlu1 %v2092_v22 }
 0x237   : > { %1111 = vadd.xlane.f32.xlu1 %v1082_v30 }
 0x252   : > { %v873_v49 = vpop.permute.xlu1 %872 }
 0x253   : > { %v942_v24 = vsub.f32 %v2073_v13, %v873_v49 }
 0x255   : > { %v960_v33 = vmul.f32 1.442695, %v942_v24 }
 0x256   : > { %v863_v21 = vpop.permute.xlu0 %862  ;;  %v913_v38 = vpop.permute.xlu1 %912 }
 0x257   : > { %1618 = vpow2.f32 %v960_v33  ;;  %v940_v59 = vsub.f32 %v2103_v28, %v863_v21  ;;  %v950_v62 = vsub.f32 %v2068_v12, %v913_v38 }
 0x259   : > { %v956_v26 = vmul.f32 1.442695, %v940_v59  ;;  %v976_v34 = vmul.f32 1.442695, %v950_v62 }
 0x25a   : > { %v903_v20 = vpop.permute.xlu1 %902 }
 0x25b   : > { %1620 = vpow2.f32 %v956_v26  ;;  %v948_v22 = vsub.f32 %v2150_v45, %v903_v20 }
 0x25c   : > { %1622 = vpow2.f32 %v976_v34 }
 0x25d   : > { %v972_v57 = vmul.f32 1.442695, %v948_v22 }
 0x25e   : > { %v908_v5 = vpop.permute.xlu0 %907  ;;  %v878_v8 = vpop.permute.xlu1 %877 }
 0x25f   : > { %1624 = vpow2.f32 %v972_v57  ;;  %v943_v13 = vsub.f32 %v2107_v31, %v878_v8  ;;  %v949_v12 = vsub.f32 %v2180_v0, %v908_v5 }
 0x261   : > { %v1619_v63 = vpop.eup %1618  ;;  %v962_v46 = vmul.f32 1.442695, %v943_v13  ;;  %v974_v24 = vmul.f32 1.442695, %v949_v12 }
 0x262   : > { %v918_v48 = vpop.permute.xlu0 %917  ;;  %992 = vadd.xlane.f32.xlu0 %v1619_v63  ;;  %v868_v28 = vpop.permute.xlu1 %867 }
 0x263   : > { %v951_v25 = vsub.f32 %v2154_v47, %v918_v48  ;;  %v941_v54 = vsub.f32 %v2184_v1, %v868_v28  ;;  %1626 = vpow2.f32 %v962_v46 }
 0x265   : > { %v1621_v45 = vpop.eup %1620  ;;  %v978_v42 = vmul.f32 1.442695, %v951_v25  ;;  %v958_v43 = vmul.f32 1.442695, %v941_v54 }
 0x266   : > { %v1623_v30 = vpop.eup %1622  ;;  %988 = vadd.xlane.f32.xlu1 %v1621_v45  ;;  %v893_v49 = vpop.permute.xlu1 %892 }
 0x267   : > { %1628 = vpow2.f32 %v978_v42  ;;  %1008 = vadd.xlane.f32.xlu0 %v1623_v30  ;;  %v946_v31 = vsub.f32 %v2193_v6, %v893_v49  ;;  %v938_v38 = vpop.permute.xlu0 %937 }
 0x268   : > { %1630 = vpow2.f32 %v958_v43  ;;  %v955_v34 = vsub.f32 %v2223_v17, %v938_v38 }
 0x269   : > { %v1625_v33 = vpop.eup %1624  ;;  %v968_v21 = vmul.f32 1.442695, %v946_v31  ;;  %1632 = vpow2.f32 %v974_v24 }
 0x26a   : > { %v883_v0 = vpop.permute.xlu1 %882  ;;  %v986_v8 = vmul.f32 1.442695, %v955_v34  ;;  %v628_v34 = vld [vmem:[#allocation4 + $0x18] sm:$0xff] }
 0x26b   : > { %1004 = vadd.xlane.f32.xlu0 %v1625_v33  ;;  %1634 = vpow2.f32 %v968_v21  ;;  %v944_v46 = vsub.f32 %v2218_v15, %v883_v0 }
 0x26d   : > { %v1627_v47 = vpop.eup %1626  ;;  %v964_v25 = vmul.f32 1.442695, %v944_v46  ;;  %v636_v46 = vld [vmem:[#allocation4 + $0x58] sm:$0xff] }
 0x26e   : > { %v923_v1 = vpop.permute.xlu1 %922  ;;  %994 = vadd.xlane.f32.xlu1 %v1627_v47  ;;  %v928_v63 = vpop.permute.xlu0 %927 }
 0x26f   : > { %v953_v17 = vsub.f32 %v2267_v29, %v928_v63  ;;  %v952_v45 = vsub.f32 %v2238_v19, %v923_v1  ;;  %v1476_v29 = vld [vmem:[%s2655_s2 + $0x38] sm:$0xff]   ;;  %v637_v1 = vld [vmem:[#allocation4 + $0x60] sm:$0xff] }
 0x270   : > { %v1469_v30 = vunpack.c.h.bf16 %v1476_v29  ;;  %v1468_v31 = vunpack.c.l.bf16 %v1476_v29  ;;  %v2713_v29 = vsub.f32 %v2322_v14, %v2337_v37  ;;  %v609_v37 = vld [vmem:[#allocation3] sm:$0xff] }
 0x271   : > { %v1629_v59 = vpop.eup %1628  ;;  %v982_v54 = vmul.f32 1.442695, %v953_v17  ;;  %v638_v17 = vld [vmem:[#allocation4 + $0x68] sm:$0xff] }
 0x272   : > { %v1631_v62 = vpop.eup %1630  ;;  %v898_v26 = vpop.permute.xlu1 %897  ;;  %1010 = vadd.xlane.f32.xlu1 %v1629_v59  ;;  %v747_v24 = vsel %vm2207_vm13, 0.0, %v1469_v30  ;;  %v746_v0 = vsel %vm2248_vm11, 0.0, %v1468_v31  ;;  %v611_v30 = vld [vmem:[#allocation3 + $0x10] sm:$0xff] }
 0x273   : > { %990 = vadd.xlane.f32.xlu0 %v1631_v62  ;;  %v947_v6 = vsub.f32 %v2197_v58, %v898_v26  ;;  %v1633_v20 = vpop.eup %1632  ;;  %v1084_v33 = vmul.f32 %v2161_v55, %v747_v24  ;;  %v1083_v47 = vmul.f32 %v2139_v39, %v746_v0  ;;  %v632_v39 = vld [vmem:[#allocation4 + $0x38] sm:$0xff] }
 0x275   : > { %v970_v22 = vmul.f32 1.442695, %v947_v6  ;;  %v1635_v57 = vpop.eup %1634 }
 0x276   : > { %v888_v5 = vpop.permute.xlu1 %887  ;;  %1006 = vadd.xlane.f32.xlu1 %v1633_v20 }
 0x277   : > { %1636 = vpow2.f32 %v970_v22  ;;  %1000 = vadd.xlane.f32.xlu0 %v1635_v57  ;;  %v945_v13 = vsub.f32 %v2254_v36, %v888_v5  ;;  %v980_v36 = vmul.f32 1.442695, %v952_v45  ;;  %v2711_v45 = vsub.f32 %v2303_v11, %v2317_v60 }
 0x278   : > { %1638 = vpow2.f32 %v986_v8  ;;  %v634_v8 = vld [vmem:[#allocation4 + $0x48] sm:$0xff]  ;;  %v2715_v11 = vsub.f32 %v2324_v18, %v2340_v40  ;;  %v2718_v18 = vsub.f32 %v2361_v4, %v2376_v2  ;;  %v612_v2 = vld [vmem:[#allocation3 + $0x18] sm:$0xff] }
 0x279   : > { %v966_v48 = vmul.f32 1.442695, %v945_v13 }
 0x27a   : > { %v933_v28 = vpop.permute.xlu1 %932  ;;  %v834_v60 = vmul.f32 1.442695, %v2715_v11  ;;  %v824_v40 = vmul.f32 1.442695, %v2718_v18 }
 0x27b   : > { %v954_v58 = vsub.f32 %v2262_v32, %v933_v28  ;;  %1640 = vpow2.f32 %v966_v48 }
 0x27d   : > { %v984_v12 = vmul.f32 1.442695, %v954_v58 }
 0x27f   : > { %1642 = vpow2.f32 %v984_v12 }
 0x280   : > { %1644 = vpow2.f32 %v964_v25  ;;  %v2710_v25 = vsub.f32 %v2295_v50, %v2301_v51 }
 0x281   : > { %v1637_v42 = vpop.eup %1636  ;;  %1646 = vpow2.f32 %v982_v54 }
 0x282   : > { %1002 = vadd.xlane.f32.xlu1 %v1637_v42  ;;  %v1639_v15 = vpop.eup %1638  ;;  %1648 = vpow2.f32 %v980_v36  ;;  %v816_v54 = vmul.f32 1.442695, %v2710_v25  ;;  %v812_v42 = vmul.f32 1.442695, %v2711_v45  ;;  %v2712_v36 = vsub.f32 %v2293_v56, %v2298_v52 }
 0x283   : > { %v2716_v56 = vsub.f32 %v2344_v16, %v2359_v7 }
 0x284   : > { %1650 = vpow2.f32 %v816_v54 }
 0x285   : > { %v1641_v32 = vpop.eup %1640  ;;  %1652 = vpow2.f32 %v812_v42  ;;  %v814_v52 = vmul.f32 1.442695, %v2716_v56  ;;  %v2723_v42 = vld [vmem:[#allocation10_spill] sm:$0xff]  ;;  %v2728_v56 = vld [vmem:[#allocation7_spill] sm:$0xff] }
 0x286   : > { %1018 = vadd.xlane.f32.xlu1 %v1639_v15  ;;  %v832_v15 = vmul.f32 1.442695, %v2712_v36  ;;  %v2724_v36 = vsub.f32 %v2723_v42, %v2419_v10  ;;  %v2730_v10 = vld [vmem:[#allocation13_spill] sm:$0xff] }
 0x288   : > { %1654 = vpow2.f32 %v832_v15  ;;  %v822_v15 = vmul.f32 1.442695, %v2724_v36  ;;  %v1155_v36 = vld [vmem:[#allocation4 + $0x10] sm:$0xff] (!%p1435_p8) }
 0x289   : > { %v1643_v43 = vpop.eup %1642  ;;  %1171 = vst.msk [vmem:[%s1831_s9 + $0x10] sm:$0xff] (!%p1435_p8), %vm1036_vm3, %v1155_v36 }
 0x28a   : > { %998 = vadd.xlane.f32.xlu1 %v1641_v32  ;;  %1016 = vadd.xlane.f32.xlu0 %v1643_v43  ;;  %v1645_v49 = vpop.eup %1644  ;;  %v828_v32 = vmul.f32 1.442695, %v2713_v29  ;;  %v2714_v43 = vsub.f32 %v2305_v44, %v2320_v9  ;;  %v619_v44 = vld [vmem:[#allocation3 + $0x50] sm:$0xff]  ;;  %v2717_v9 = vsub.f32 %v2342_v41, %v2356_v61 }
 0x28b   : > { %v1647_v19 = vpop.eup %1646 }
 0x28c   : > { %v1649_v21 = vpop.eup %1648  ;;  %v818_v50 = vmul.f32 1.442695, %v2714_v43  ;;  %1656 = vpow2.f32 %v828_v32  ;;  %v2725_v43 = vld [vmem:[#allocation12_spill] sm:$0xff] }
 0x28e   : > { %1014 = vadd.xlane.f32.xlu1 %v1647_v19  ;;  %996 = vadd.xlane.f32.xlu0 %v1645_v49  ;;  %v1651_v51 = vpop.eup %1650  ;;  %1658 = vpow2.f32 %v818_v50  ;;  %v2726_v50 = vsub.f32 %v2725_v43, %v2435_v35  ;;  %v2733_v35 = vld [vmem:[#allocation9_spill] sm:$0xff]  ;;  %v1159_v43 = vld [vmem:[#allocation4 + $0x30] sm:$0xff] (!%p1435_p8) }
 0x28f   : > { %v846_v49 = vmul.f32 %v1651_v51, %v611_v30  ;;  %v1653_v19 = vpop.eup %1652  ;;  %1660 = vpow2.f32 %v834_v60  ;;  %v2727_v60 = vld [vmem:[#allocation5_spill] sm:$0xff]  ;;  %1175 = vst.msk [vmem:[%s1831_s9 + $0x30] sm:$0xff] (!%p1435_p8), %vm1036_vm3, %v1159_v43 }
 0x290   : > { %1662 = vpow2.f32 %v814_v52  ;;  %v844_v16 = vmul.f32 %v1653_v19, %v609_v37  ;;  %v840_v51 = vmul.f32 1.442695, %v2726_v50  ;;  %v2729_v52 = vsub.f32 %v2727_v60, %v2728_v56  ;;  %v2731_v19 = vld [vmem:[#allocation14_spill] sm:$0xff] }
 0x292   : > { %1115 = vadd.xlane.f32.xlu1 %v1084_v33  ;;  %1012 = vadd.xlane.f32.xlu0 %v1649_v21  ;;  %v1655_v24 = vpop.eup %1654  ;;  %v830_v33 = vmul.f32 1.442695, %v2717_v9 }
 0x293   : > { %v854_v7 = vmul.f32 %v1655_v24, %v619_v44  ;;  %v2734_v44 = vld [vmem:[#allocation11_spill] sm:$0xff] }
 0x294   : > { %1664 = vpow2.f32 %v830_v33  ;;  %v2735_v9 = vsub.f32 %v2733_v35, %v2734_v44 }
 0x295   : > { %1666 = vpow2.f32 %v824_v40 }
 0x296   : > { %1113 = vadd.xlane.f32.xlu0 %v1083_v47  ;;  %v1657_v0 = vpop.eup %1656  ;;  %v836_v33 = vmul.f32 1.442695, %v2735_v9 }
 0x298   : > { %v1659_v61 = vpop.eup %1658 }
 0x29b   : > { %v1110_v38 = vpop.xlane.xlu0 %1109 }
 0x29c   : > { %v1129_v59 = vadd.f32 %v1110_v38, %v637_v1  ;;  %v617_v38 = vld [vmem:[#allocation3 + $0x40] sm:$0xff] }
 0x29d   : > { %v852_v41 = vmul.f32 %v1657_v0, %v617_v38 }
 0x29e   : > { %1145 = vst.msk [vmem:[#allocation4 + $0x60] sm:$0xff] %vm1036_vm3, %v1129_v59 }
 0x2a5   : > { %v1165_v56 = vld [vmem:[#allocation4 + $0x60] sm:$0xff] (!%p1435_p8) }
 0x2a6   : > { %1181 = vst.msk [vmem:[%s1831_s9 + $0x60] sm:$0xff] (!%p1435_p8), %vm1036_vm3, %v1165_v56 }
 0x2ac   : > { %v1088_v62 = vpop.xlane.xlu1 %1087 }
 0x2ad   : > { %v1118_v26 = vadd.f32 %v1088_v62, %v626_v27  ;;  %v1661_v62 = vpop.eup %1660 }
 0x2af   : > { %1134 = vst.msk [vmem:[#allocation4 + $0x8] sm:$0xff] %vm1036_vm3, %v1118_v26  ;;  %v847_v26 = vmul.f32 %v1659_v61, %v612_v2 }
 0x2b0   : > { %v1092_v55 = vpop.xlane.xlu1 %1091 }
 0x2b1   : > { %v1120_v6 = vadd.f32 %v1092_v55, %v628_v34  ;;  %v1663_v34 = vpop.eup %1662 }
 0x2b3   : > { %1136 = vst.msk [vmem:[#allocation4 + $0x18] sm:$0xff] %vm1036_vm3, %v1120_v6  ;;  %v610_v6 = vld [vmem:[#allocation3 + $0x8] sm:$0xff] }
 0x2b4   : > { %v1096_v20 = vpop.xlane.xlu1 %1095 }
 0x2b5   : > { %v1122_v22 = vadd.f32 %v1096_v20, %v630_v23  ;;  %v620_v23 = vld [vmem:[#allocation3 + $0x58] sm:$0xff]  ;;  %v2719_v20 = vsub.f32 %v2363_v53, %v2379_v3 }
 0x2b6   : > { %v1154_v42 = vld [vmem:[#allocation4 + $0x8] sm:$0xff] (!%p1435_p8) }
 0x2b7   : > { %1138 = vst.msk [vmem:[#allocation4 + $0x28] sm:$0xff] %vm1036_vm3, %v1122_v22  ;;  %v826_v22 = vmul.f32 1.442695, %v2719_v20  ;;  %1170 = vst.msk [vmem:[%s1831_s9 + $0x8] sm:$0xff] (!%p1435_p8), %vm1036_vm3, %v1154_v42 }
 0x2b8   : > { %v1100_v57 = vpop.xlane.xlu1 %1099 }
 0x2b9   : > { %v1124_v5 = vadd.f32 %v1100_v57, %v632_v39  ;;  %v1665_v57 = vpop.eup %1664  ;;  %1668 = vpow2.f32 %v826_v22 }
 0x2bb   : > { %1140 = vst.msk [vmem:[#allocation4 + $0x38] sm:$0xff] %vm1036_vm3, %v1124_v5  ;;  %v845_v5 = vmul.f32 %v1663_v34, %v610_v6  ;;  %v622_v6 = vld [vmem:[#allocation3 + $0x68] sm:$0xff] }
 0x2bc   : > { %v1104_v13 = vpop.xlane.xlu1 %1103 }
 0x2bd   : > { %v1126_v63 = vadd.f32 %v1104_v13, %v634_v8  ;;  %v855_v8 = vmul.f32 %v1661_v62, %v620_v23  ;;  %v1667_v13 = vpop.eup %1666 }
 0x2bf   : > { %1142 = vst.msk [vmem:[#allocation4 + $0x48] sm:$0xff] %vm1036_vm3, %v1126_v63 }
 0x2c0   : > { %v1108_v48 = vpop.xlane.xlu1 %1107 }
 0x2c1   : > { %v1128_v28 = vadd.f32 %v1108_v48, %v636_v46  ;;  %v615_v48 = vld [vmem:[#allocation3 + $0x30] sm:$0xff] }
 0x2c2   : > { %v850_v53 = vmul.f32 %v1667_v13, %v615_v48  ;;  %v621_v13 = vld [vmem:[#allocation3 + $0x60] sm:$0xff]  ;;  %v640_v48 = vld [vmem:[#allocation4 + $0x78] sm:$0xff] }
 0x2c3   : > { %1144 = vst.msk [vmem:[#allocation4 + $0x58] sm:$0xff] %vm1036_vm3, %v1128_v28  ;;  %v618_v28 = vld [vmem:[#allocation3 + $0x48] sm:$0xff]  ;;  %v1669_v24 = vpop.eup %1668  ;;  %v1160_v50 = vld [vmem:[#allocation4 + $0x38] sm:$0xff] (!%p1435_p8) }
 0x2c4   : > { %v1112_v58 = vpop.xlane.xlu1 %1111  ;;  %v853_v3 = vmul.f32 %v1665_v57, %v618_v28  ;;  %1176 = vst.msk [vmem:[%s1831_s9 + $0x38] sm:$0xff] (!%p1435_p8), %vm1036_vm3, %v1160_v50  ;;  %v1195_v50 = vld [vmem:[#allocation2 + $0x50] sm:$0xff] (!%p1435_p8) }
 0x2c5   : > { %v1130_v12 = vadd.f32 %v1112_v58, %v638_v17  ;;  %v2720_v17 = vld [vmem:[#allocation6_spill] sm:$0xff]  ;;  %v2721_v58 = vld [vmem:[#allocation8_spill] sm:$0xff] }
 0x2c7   : > { %1146 = vst.msk [vmem:[#allocation4 + $0x68] sm:$0xff] %vm1036_vm3, %v1130_v12  ;;  %v2722_v12 = vsub.f32 %v2720_v17, %v2721_v58 }
 0x2c9   : > { %v842_v25 = vmul.f32 1.442695, %v2722_v12 }
 0x2ca   : > { %v1164_v60 = vld [vmem:[#allocation4 + $0x58] sm:$0xff] (!%p1435_p8) }
 0x2cb   : > { %1670 = vpow2.f32 %v842_v25  ;;  %1180 = vst.msk [vmem:[%s1831_s9 + $0x58] sm:$0xff] (!%p1435_p8), %vm1036_vm3, %v1164_v60  ;;  %v1196_v60 = vld [vmem:[#allocation2 + $0x58] sm:$0xff] (!%p1435_p8) }
 0x2cc   : > { %1672 = vpow2.f32 %v822_v15  ;;  %v1156_v15 = vld [vmem:[#allocation4 + $0x18] sm:$0xff] (!%p1435_p8) }
 0x2cd   : > { %1674 = vpow2.f32 %v840_v51  ;;  %1172 = vst.msk [vmem:[%s1831_s9 + $0x18] sm:$0xff] (!%p1435_p8), %vm1036_vm3, %v1156_v15  ;;  %v1161_v51 = vld [vmem:[#allocation4 + $0x40] sm:$0xff] (!%p1435_p8)  ;;  %v1194_v15 = vld [vmem:[#allocation2 + $0x48] sm:$0xff] (!%p1435_p8) }
 0x2ce   : > { %1177 = vst.msk [vmem:[%s1831_s9 + $0x40] sm:$0xff] (!%p1435_p8), %vm1036_vm3, %v1161_v51 }
 0x2d5   : > { %v1671_v40 = vpop.eup %1670 }
 0x2d6   : > { %v1673_v0 = vpop.eup %1672 }
 0x2ef   : > { %v993_v14 = vpop.xlane.xlu0 %992 }
 0x2f0   : > { %v1022_v31 = vadd.f32 %v993_v14, %v846_v49  ;;  %v820_v49 = vmul.f32 1.442695, %v2729_v52  ;;  %v2732_v14 = vsub.f32 %v2730_v10, %v2731_v19  ;;  %v1166_v52 = vld [vmem:[#allocation4 + $0x68] sm:$0xff] (!%p1435_p8) }
 0x2f1   : > { %1182 = vst.msk [vmem:[%s1831_s9 + $0x68] sm:$0xff] (!%p1435_p8), %vm1036_vm3, %v1166_v52 }
 0x2f2   : > { %1039 = vst.msk [vmem:[#allocation3 + $0x10] sm:$0xff] %vm1036_vm3, %v1022_v31  ;;  %v838_v37 = vmul.f32 1.442695, %v2732_v14  ;;  %v616_v31 = vld [vmem:[#allocation3 + $0x38] sm:$0xff]  ;;  %1676 = vpow2.f32 %v820_v49 }
 0x2f3   : > { %v989_v21 = vpop.xlane.xlu1 %988  ;;  %v851_v18 = vmul.f32 %v1669_v24, %v616_v31 }
 0x2f4   : > { %v1009_v47 = vpop.xlane.xlu0 %1008  ;;  %v1020_v1 = vadd.f32 %v989_v21, %v844_v16  ;;  %1678 = vpow2.f32 %v838_v37 }
 0x2f5   : > { %v1030_v59 = vadd.f32 %v1009_v47, %v854_v7  ;;  %v624_v7 = vld [vmem:[#allocation3 + $0x78] sm:$0xff]  ;;  %1680 = vpow2.f32 %v836_v33 }
 0x2f6   : > { %1037 = vst.msk [vmem:[#allocation3] sm:$0xff] %vm1036_vm3, %v1020_v1  ;;  %v859_v47 = vmul.f32 %v1671_v40, %v624_v7  ;;  %v1675_v1 = vpop.eup %1674 }
 0x2f7   : > { %1047 = vst.msk [vmem:[#allocation3 + $0x50] sm:$0xff] %vm1036_vm3, %v1030_v59  ;;  %v623_v59 = vld [vmem:[#allocation3 + $0x70] sm:$0xff] }
 0x2f8   : > { %v1005_v4 = vpop.xlane.xlu0 %1004  ;;  %v858_v2 = vmul.f32 %v1675_v1, %v623_v59  ;;  %v1186_v59 = vld [vmem:[#allocation2 + $0x8] sm:$0xff] (!%p1435_p8) }
 0x2f9   : > { %v1028_v27 = vadd.f32 %v1005_v4, %v852_v41  ;;  %v614_v41 = vld [vmem:[#allocation3 + $0x28] sm:$0xff]  ;;  %v1203_v37 = vld [vmem:[#allocation3 + $0x10] sm:$0xff] (!%p1435_p8) }
 0x2fb   : > { %1045 = vst.msk [vmem:[#allocation3 + $0x40] sm:$0xff] %vm1036_vm3, %v1028_v27  ;;  %v995_v55 = vpop.xlane.xlu1 %994  ;;  %v849_v27 = vmul.f32 %v1673_v0, %v614_v41  ;;  %v1185_v0 = vld [vmem:[#allocation2] sm:$0xff] (!%p1435_p8) }
 0x2fc   : > { %v1023_v39 = vadd.f32 %v995_v55, %v847_v26  ;;  %v1677_v4 = vpop.eup %1676  ;;  %v613_v55 = vld [vmem:[#allocation3 + $0x20] sm:$0xff] }
 0x2fd   : > { %v848_v22 = vmul.f32 %v1677_v4, %v613_v55  ;;  %v1201_v19 = vld [vmem:[#allocation3] sm:$0xff] (!%p1435_p8)  ;;  %v1188_v55 = vld [vmem:[#allocation2 + $0x18] sm:$0xff] (!%p1435_p8) }
 0x2fe   : > { %1040 = vst.msk [vmem:[#allocation3 + $0x18] sm:$0xff] %vm1036_vm3, %v1023_v39  ;;  %v1679_v62 = vpop.eup %1678  ;;  %1682 = vlog2.f32 (!%p1435_p8), %v1201_v19  ;;  %v1211_v40 = vld [vmem:[#allocation3 + $0x50] sm:$0xff] (!%p1435_p8) }
 0x2ff   : > { %v1011_v46 = vpop.xlane.xlu1 %1010  ;;  %v857_v39 = vmul.f32 %v1679_v62, %v622_v6  ;;  %v1681_v57 = vpop.eup %1680 }
 0x300   : > { %v991_v63 = vpop.xlane.xlu0 %990  ;;  %v1031_v45 = vadd.f32 %v1011_v46, %v855_v8  ;;  %v856_v28 = vmul.f32 %v1681_v57, %v621_v13 }
 0x301   : > { %v1021_v54 = vadd.f32 %v991_v63, %v845_v5 }
 0x302   : > { %1048 = vst.msk [vmem:[#allocation3 + $0x58] sm:$0xff] %vm1036_vm3, %v1031_v45  ;;  %v1209_v33 = vld [vmem:[#allocation3 + $0x40] sm:$0xff] (!%p1435_p8) }
 0x303   : > { %1038 = vst.msk [vmem:[#allocation3 + $0x8] sm:$0xff] %vm1036_vm3, %v1021_v54  ;;  %v1007_v32 = vpop.xlane.xlu1 %1006  ;;  %v639_v54 = vld [vmem:[#allocation4 + $0x70] sm:$0xff] }
 0x304   : > { %v1001_v29 = vpop.xlane.xlu0 %1000  ;;  %v1029_v11 = vadd.f32 %v1007_v32, %v853_v3  ;;  %v1153_v3 = vld [vmem:[#allocation4] sm:$0xff] (!%p1435_p8)  ;;  %v1158_v32 = vld [vmem:[#allocation4 + $0x28] sm:$0xff] (!%p1435_p8) }
 0x305   : > { %v1026_v30 = vadd.f32 %v1001_v29, %v850_v53  ;;  %1169 = vst.msk [vmem:[%s1831_s9] sm:$0xff] (!%p1435_p8), %vm1036_vm3, %v1153_v3  ;;  %v1157_v29 = vld [vmem:[#allocation4 + $0x20] sm:$0xff] (!%p1435_p8)  ;;  %1174 = vst.msk [vmem:[%s1831_s9 + $0x28] sm:$0xff] (!%p1435_p8), %vm1036_vm3, %v1158_v32  ;;  %v1204_v24 = vld [vmem:[#allocation3 + $0x18] sm:$0xff] (!%p1435_p8) }
 0x306   : > { %1046 = vst.msk [vmem:[#allocation3 + $0x48] sm:$0xff] %vm1036_vm3, %v1029_v11  ;;  %1173 = vst.msk [vmem:[%s1831_s9 + $0x20] sm:$0xff] (!%p1435_p8), %vm1036_vm3, %v1157_v29  ;;  %v1163_v11 = vld [vmem:[#allocation4 + $0x50] sm:$0xff] (!%p1435_p8) }
 0x307   : > { %1043 = vst.msk [vmem:[#allocation3 + $0x30] sm:$0xff] %vm1036_vm3, %v1026_v30  ;;  %v1162_v30 = vld [vmem:[#allocation4 + $0x48] sm:$0xff] (!%p1435_p8)  ;;  %1179 = vst.msk [vmem:[%s1831_s9 + $0x50] sm:$0xff] (!%p1435_p8), %vm1036_vm3, %v1163_v11 }
 0x308   : > { %1178 = vst.msk [vmem:[%s1831_s9 + $0x48] sm:$0xff] (!%p1435_p8), %vm1036_vm3, %v1162_v30 }
 0x30a   : > { %v1202_v14 = vld [vmem:[#allocation3 + $0x8] sm:$0xff] (!%p1435_p8) }
 0x30b   : > { %1684 = vlog2.f32 (!%p1435_p8), %v1202_v14 }
 0x30c   : > { %1686 = vlog2.f32 (!%p1435_p8), %v1203_v37 }
 0x30d   : > { %1688 = vlog2.f32 (!%p1435_p8), %v1204_v24  ;;  %v1198_v24 = vld [vmem:[#allocation2 + $0x68] sm:$0xff] (!%p1435_p8) }
 0x30e   : > { %v1207_v44 = vld [vmem:[#allocation3 + $0x30] sm:$0xff] (!%p1435_p8) }
 0x30f   : > { %v1003_v16 = vpop.xlane.xlu1 %1002 }
 0x310   : > { %v1027_v21 = vadd.f32 %v1003_v16, %v851_v18  ;;  %v1210_v18 = vld [vmem:[#allocation3 + $0x48] sm:$0xff] (!%p1435_p8)  ;;  %v1212_v16 = vld [vmem:[#allocation3 + $0x58] sm:$0xff] (!%p1435_p8) }
 0x312   : > { %1044 = vst.msk [vmem:[#allocation3 + $0x38] sm:$0xff] %vm1036_vm3, %v1027_v21  ;;  %v1683_v21 = vpop.eup (!%p1435_p8), %1682 }
 0x313   : > { %v1019_v38 = vpop.xlane.xlu1 %1018 }
 0x314   : > { %v1035_v61 = vadd.f32 %v1019_v38, %v859_v47  ;;  %v1218_v38 = vmul.f32 (!%p1435_p8), 0.6931472, %v1683_v21 }
 0x315   : > { %v1685_v1 = vpop.eup (!%p1435_p8), %1684 }
 0x316   : > { %1052 = vst.msk [vmem:[#allocation3 + $0x78] sm:$0xff] %vm1036_vm3, %v1035_v61  ;;  %v1687_v61 = vpop.eup (!%p1435_p8), %1686  ;;  %v1220_v4 = vmul.f32 (!%p1435_p8), 0.6931472, %v1685_v1 }
 0x317   : > { %v1017_v26 = vpop.xlane.xlu0 %1016  ;;  %v999_v34 = vpop.xlane.xlu1 %998 }
 0x318   : > { %v1034_v23 = vadd.f32 %v1017_v26, %v858_v2  ;;  %v1025_v20 = vadd.f32 %v999_v34, %v849_v27  ;;  %v1187_v2 = vld [vmem:[#allocation2 + $0x10] sm:$0xff] (!%p1435_p8)  ;;  %v1689_v62 = vpop.eup (!%p1435_p8), %1688  ;;  %v1249_v26 = vadd.f32 (!%p1435_p8), %v1218_v38, %v1185_v0  ;;  %v1222_v34 = vmul.f32 (!%p1435_p8), 0.6931472, %v1687_v61 }
 0x319   : > { %v1208_v9 = vld [vmem:[#allocation3 + $0x38] sm:$0xff] (!%p1435_p8) }
 0x31a   : > { %1051 = vst.msk [vmem:[#allocation3 + $0x70] sm:$0xff] %vm1036_vm3, %v1034_v23  ;;  %1042 = vst.msk [vmem:[#allocation3 + $0x28] sm:$0xff] %vm1036_vm3, %v1025_v20  ;;  %v1250_v23 = vadd.f32 (!%p1435_p8), %v1220_v4, %v1186_v59  ;;  %v1224_v20 = vmul.f32 (!%p1435_p8), 0.6931472, %v1689_v62  ;;  %v1251_v57 = vadd.f32 (!%p1435_p8), %v1222_v34, %v1187_v2 }
 0x31b   : > { %v997_v5 = vpop.xlane.xlu0 %996  ;;  %v1015_v8 = vpop.xlane.xlu1 %1014  ;;  %1265 = vst.msk [vmem:[%s1836_s12] sm:$0xff] (!%p1435_p8), %vm1036_vm3, %v1249_v26 }
 0x31c   : > { %v1024_v63 = vadd.f32 %v997_v5, %v848_v22  ;;  %v1033_v46 = vadd.f32 %v1015_v8, %v857_v39  ;;  %v1189_v22 = vld [vmem:[#allocation2 + $0x20] sm:$0xff] (!%p1435_p8)  ;;  %v1190_v8 = vld [vmem:[#allocation2 + $0x28] sm:$0xff] (!%p1435_p8)  ;;  %1266 = vst.msk [vmem:[%s1836_s12 + $0x8] sm:$0xff] (!%p1435_p8), %vm1036_vm3, %v1250_v23  ;;  %1267 = vst.msk [vmem:[%s1836_s12 + $0x10] sm:$0xff] (!%p1435_p8), %vm1036_vm3, %v1251_v57 }
 0x31d   : > { %v1216_v27 = vld [vmem:[#allocation3 + $0x78] sm:$0xff] (!%p1435_p8) }
 0x31e   : > { %1041 = vst.msk [vmem:[#allocation3 + $0x20] sm:$0xff] %vm1036_vm3, %v1024_v63  ;;  %1050 = vst.msk [vmem:[#allocation3 + $0x68] sm:$0xff] %vm1036_vm3, %v1033_v46  ;;  %v1252_v63 = vadd.f32 (!%p1435_p8), %v1224_v20, %v1188_v55 }
 0x31f   : > { %v1013_v17 = vpop.xlane.xlu0 %1012  ;;  %v1116_v58 = vpop.xlane.xlu1 %1115 }
 0x320   : > { %v1032_v12 = vadd.f32 %v1013_v17, %v856_v28  ;;  %v1132_v25 = vadd.f32 %v1116_v58, %v640_v48  ;;  %1152 = sbr.rel (%p1435_p8) target bundleno = 833 (0x341), region = 40  ;;  %v1191_v48 = vld [vmem:[#allocation2 + $0x30] sm:$0xff] (!%p1435_p8)  ;;  %1268 = vst.msk [vmem:[%s1836_s12 + $0x18] sm:$0xff] (!%p1435_p8), %vm1036_vm3, %v1252_v63 }
 0x321   : > { %v1206_v35 = vld [vmem:[#allocation3 + $0x28] sm:$0xff] (!%p1435_p8)  ;;  %v1215_v41 = vld [vmem:[#allocation3 + $0x70] sm:$0xff] (!%p1435_p8) }
 0x322   : > { %1049 = vst.msk [vmem:[#allocation3 + $0x60] sm:$0xff] %vm1036_vm3, %v1032_v12  ;;  %1148 = vst.msk [vmem:[#allocation4 + $0x78] sm:$0xff] %vm1036_vm3, %v1132_v25  ;;  %v1192_v12 = vld [vmem:[#allocation2 + $0x38] sm:$0xff] (!%p1435_p8) }
 0x323   : > { %v1114_v45 = vpop.xlane.xlu0 %1113 }
 0x324   : > { %v1131_v53 = vadd.f32 %v1114_v45, %v639_v54 }
 0x325   : > { %v1205_v31 = vld [vmem:[#allocation3 + $0x20] sm:$0xff] (!%p1435_p8)  ;;  %v1214_v47 = vld [vmem:[#allocation3 + $0x68] sm:$0xff] (!%p1435_p8) }
 0x326   : > { %1147 = vst.msk [vmem:[#allocation4 + $0x70] sm:$0xff] %vm1036_vm3, %v1131_v53  ;;  %1690 = vlog2.f32 (!%p1435_p8), %v1205_v31  ;;  %v1193_v53 = vld [vmem:[#allocation2 + $0x40] sm:$0xff] (!%p1435_p8) }
 0x327   : > { %1692 = vlog2.f32 %v1206_v35 }
 0x328   : > { %1694 = vlog2.f32 %v1207_v44 }
 0x329   : > { %v1168_v10 = vld [vmem:[#allocation4 + $0x78] sm:$0xff]  ;;  %1696 = vlog2.f32 %v1208_v9  ;;  %v1213_v7 = vld [vmem:[#allocation3 + $0x60] sm:$0xff]  ;;  %v1199_v9 = vld [vmem:[#allocation2 + $0x70] sm:$0xff] }
 0x32a   : > { %1184 = vst.msk [vmem:[%s1831_s9 + $0x78] sm:$0xff] %vm1036_vm3, %v1168_v10  ;;  %1698 = vlog2.f32 %v1209_v33  ;;  %v1197_v10 = vld [vmem:[#allocation2 + $0x60] sm:$0xff] }
 0x32b   : > { %1700 = vlog2.f32 %v1210_v18 }
 0x32c   : > { %1702 = vlog2.f32 %v1211_v40 }
 0x32d   : > { %v1167_v49 = vld [vmem:[#allocation4 + $0x70] sm:$0xff]  ;;  %1704 = vlog2.f32 %v1212_v16  ;;  %v1200_v16 = vld [vmem:[#allocation2 + $0x78] sm:$0xff] }
 0x32e   : > { %1183 = vst.msk [vmem:[%s1831_s9 + $0x70] sm:$0xff] %vm1036_vm3, %v1167_v49  ;;  %1706 = vlog2.f32 %v1213_v7 }
 0x32f   : > { %1708 = vlog2.f32 %v1214_v47 }
 0x330   : > { %v1691_v6 = vpop.eup %1690  ;;  %1710 = vlog2.f32 %v1215_v41 }
 0x331   : > { %v1693_v39 = vpop.eup %1692  ;;  %v1226_v5 = vmul.f32 0.6931472, %v1691_v6  ;;  %1712 = vlog2.f32 %v1216_v27 }
 0x332   : > { %v1695_v13 = vpop.eup %1694  ;;  %v1228_v46 = vmul.f32 0.6931472, %v1693_v39 }
 0x333   : > { %v1697_v28 = vpop.eup %1696  ;;  %v1253_v17 = vadd.f32 %v1226_v5, %v1189_v22  ;;  %v1230_v58 = vmul.f32 0.6931472, %v1695_v13 }
 0x334   : > { %v1699_v25 = vpop.eup %1698  ;;  %v1254_v54 = vadd.f32 %v1228_v46, %v1190_v8  ;;  %v1232_v45 = vmul.f32 0.6931472, %v1697_v28 }
 0x335   : > { %v1701_v3 = vpop.eup %1700  ;;  %1269 = vst.msk [vmem:[%s1836_s12 + $0x20] sm:$0xff] %vm1036_vm3, %v1253_v17  ;;  %v1255_v42 = vadd.f32 %v1230_v58, %v1191_v48  ;;  %v1234_v36 = vmul.f32 0.6931472, %v1699_v25 }
 0x336   : > { %v1703_v29 = vpop.eup %1702  ;;  %1270 = vst.msk [vmem:[%s1836_s12 + $0x28] sm:$0xff] %vm1036_vm3, %v1254_v54  ;;  %v1256_v32 = vadd.f32 %v1232_v45, %v1192_v12  ;;  %v1236_v43 = vmul.f32 0.6931472, %v1701_v3 }
 0x337   : > { %v1705_v51 = vpop.eup %1704  ;;  %1271 = vst.msk [vmem:[%s1836_s12 + $0x30] sm:$0xff] %vm1036_vm3, %v1255_v42  ;;  %v1257_v30 = vadd.f32 %v1234_v36, %v1193_v53  ;;  %v1238_v11 = vmul.f32 0.6931472, %v1703_v29 }
 0x338   : > { %v1707_v56 = vpop.eup %1706  ;;  %1272 = vst.msk [vmem:[%s1836_s12 + $0x38] sm:$0xff] %vm1036_vm3, %v1256_v32  ;;  %v1258_v52 = vadd.f32 %v1236_v43, %v1194_v15  ;;  %v1240_v49 = vmul.f32 0.6931472, %v1705_v51 }
 0x339   : > { %v1709_v19 = vpop.eup %1708  ;;  %1273 = vst.msk [vmem:[%s1836_s12 + $0x40] sm:$0xff] %vm1036_vm3, %v1257_v30  ;;  %v1259_v14 = vadd.f32 %v1238_v11, %v1195_v50  ;;  %v1242_v37 = vmul.f32 0.6931472, %v1707_v56 }
 0x33a   : > { %v1711_v31 = vpop.eup %1710  ;;  %1274 = vst.msk [vmem:[%s1836_s12 + $0x48] sm:$0xff] %vm1036_vm3, %v1258_v52  ;;  %v1260_v35 = vadd.f32 %v1240_v49, %v1196_v60  ;;  %v1244_v44 = vmul.f32 0.6931472, %v1709_v19 }
 0x33b   : > { %v1713_v33 = vpop.eup %1712  ;;  %1275 = vst.msk [vmem:[%s1836_s12 + $0x50] sm:$0xff] %vm1036_vm3, %v1259_v14  ;;  %v1261_v18 = vadd.f32 %v1242_v37, %v1197_v10  ;;  %v1246_v40 = vmul.f32 0.6931472, %v1711_v31 }
 0x33c   : > { %1276 = vst.msk [vmem:[%s1836_s12 + $0x58] sm:$0xff] %vm1036_vm3, %v1260_v35  ;;  %v1262_v7 = vadd.f32 %v1244_v44, %v1198_v24  ;;  %v1248_v21 = vmul.f32 0.6931472, %v1713_v33 }
 0x33d   : > { %1277 = vst.msk [vmem:[%s1836_s12 + $0x60] sm:$0xff] %vm1036_vm3, %v1261_v18  ;;  %v1263_v0 = vadd.f32 %v1246_v40, %v1199_v9 }
 0x33e   : > { %1278 = vst.msk [vmem:[%s1836_s12 + $0x68] sm:$0xff] %vm1036_vm3, %v1262_v7  ;;  %v1264_v47 = vadd.f32 %v1248_v21, %v1200_v16 }
 0x33f   : > { %1279 = vst.msk [vmem:[%s1836_s12 + $0x70] sm:$0xff] %vm1036_vm3, %v1263_v0 }
 0x340   : > { %1280 = vst.msk [vmem:[%s1836_s12 + $0x78] sm:$0xff] %vm1036_vm3, %v1264_v47 }
 0x341 PF: > { %s15_s19 = sadd.s32 1, %s1752_s19   ;;  %s2736_s15 = smov %s1744_s17 }
 0x342   : > { %p12_p9 = scmp.ge.s32.totalorder %s15_s19, 6   ;;  %s2737_s16 = smov %s1748_s18 }
 0x343   : > { %s2738_s17 = smov %s2741_s20  ;;  %s2739_s18 = smov %s2745_s21 }
 0x344   :  { %14 = sbr.rel (!%p12_p9) target bundleno = 3 (0x3), region = 85 }

</bundles_post_ra>
